<compile_context>
chip_gen: v7x
topology: tpu7x:2x2x1
jax: 0.10.0
libtpu: 0.0.40
codegen_flags: <defaults>
</compile_context>

<pallas_src>
import jax
import jax.numpy as jnp
import numpy as np
from jax import lax
from jax.experimental import pallas as pl
from jax.experimental.pallas import tpu as pltpu

EPS = 1e-8
VMEM_LIMIT = 32 * 1024 * 1024     # safe scoped-VMEM bump on v5e/v6e/v7x


# ----------------------------------------------------------------------------
# In-kernel math helpers (traced inside the Pallas kernels).
# ----------------------------------------------------------------------------
def _rms_norm(x, eps=EPS):
    # Matches the module's custom rms_norm(): mean-centering + unbiased=False
    # variance (i.e. LayerNorm without affine). rsqrt -> EUP slot.
    mean = jnp.mean(x, axis=-1, keepdims=True)
    var = jnp.mean(jnp.square(x - mean), axis=-1, keepdims=True)
    return (x - mean) * lax.rsqrt(var + eps)


def _quant_rows(x):
    # activation_quant factored into an integer-valued tensor plus a per-row
    # scale:  clamp(round(s*x), -128, 127) / s  ==  q * (amax / 127),
    # with s = 127 / amax.  q and the ternary weights are exact in bf16, so
    # bf16 MXU inputs + f32 accumulation + post-scale is numerically lossless.
    # (No clamp on amax, mirroring the PyTorch module: an all-zero row -> NaN.)
    amax = jnp.max(jnp.abs(x), axis=-1, keepdims=True)
    s = 127.0 / amax
    q = jnp.clip(jnp.round(s * x), -128.0, 127.0)
    return q, amax * (1.0 / 127.0)


def _pick_block(dim, target, align):
    """Largest multiple of `align` <= target that divides dim, else full dim."""
    if dim <= target:
        return dim
    blk = (target // align) * align
    while blk >= align:
        if dim % blk == 0:
            return blk
        blk -= align
    return dim


# ----------------------------------------------------------------------------
# Kernel 1: gate pre-projection (hoisted out of the sequential recurrence).
#   xq = quant(rms_norm(x));  [f|c|g]_lin = xq @ sign([Wf|Wc|Wg]).T + [bf|bc|bg]
# ----------------------------------------------------------------------------
def _gates_kernel(x_ref, w_ref, b_ref, f_ref, c_ref, g_ref):
    h = f_ref.shape[-1]
    q, scale = _quant_rows(_rms_norm(x_ref[...]))              # (TN,E), (TN,1)
    acc = jnp.dot(q.astype(jnp.bfloat16), w_ref[...],          # bf16 MXU, exact
                  preferred_element_type=jnp.float32)          # (TN, 3H)
    gates = acc * scale + b_ref[...]
    f_ref[...] = gates[:, 0 * h:1 * h]
    c_ref[...] = gates[:, 1 * h:2 * h]
    g_ref[...] = gates[:, 2 * h:3 * h]


def _gate_preprojection(x_flat, w_fcg, b_fcg, *, row_blk):
    n, e = x_flat.shape
    h3 = w_fcg.shape[1]
    h = h3 // 3
    return pl.pallas_call(
        _gates_kernel,
        out_shape=tuple(jax.ShapeDtypeStruct((n, h), jnp.float32)
                        for _ in range(3)),
        grid_spec=pltpu.PrefetchScalarGridSpec(
            num_scalar_prefetch=0,
            grid=(n // row_blk,),
            in_specs=[
                pl.BlockSpec((row_blk, e), lambda i: (i, 0)),
                pl.BlockSpec((e, h3), lambda i: (0, 0)),
                pl.BlockSpec((1, h3), lambda i: (0, 0)),
            ],
            out_specs=tuple(pl.BlockSpec((row_blk, h), lambda i: (i, 0))
                            for _ in range(3)),
        ),
        compiler_params=pltpu.CompilerParams(
            dimension_semantics=("parallel",),
            vmem_limit_bytes=VMEM_LIMIT),
        cost_estimate=pl.CostEstimate(
            flops=2 * n * e * h3,
            transcendentals=2 * n,
            bytes_accessed=4 * n * e + 2 * e * h3 + 3 * 4 * n * h),
    )(x_flat, w_fcg, b_fcg)


# ----------------------------------------------------------------------------
# Kernel 2: MLGRU recurrence as a pure element-wise, time-chunked scan.
# ----------------------------------------------------------------------------
def _make_mlgru_scan_kernel(t_blk):
    def kernel(f_ref, c_ref, g_ref, o_ref, h_scr):
        @pl.when(pl.program_id(0) == 0)
        def _():
            h_scr[...] = jnp.zeros_like(h_scr)

        # Whole-chunk gate activations (vectorized over T_BLK; sigmoids hit the
        # EUP).  Only the h update below is strictly sequential.
        f = jax.nn.sigmoid(f_ref[...])                       # (B, T_BLK, H)
        c_lin = c_ref[...]
        u = (1.0 - f) * (c_lin * jax.nn.sigmoid(c_lin))      # (1 - f) * silu(c)
        g = jax.nn.sigmoid(g_ref[...])

        h = h_scr[...]                                       # (B, H)
        for i in range(t_blk):   # static unroll -> static sublane indices only
            h = f[:, i, :] * h + u[:, i, :]
            o_ref[:, i:i + 1, :] = (g[:, i, :] * h)[:, None, :]
        h_scr[...] = h
    return kernel


def _mlgru_scan(f_lin, c_lin, g_lin, *, t_blk):
    b, t, h = f_lin.shape
    spec = pl.BlockSpec((b, t_blk, h), lambda i: (0, i, 0))
    return pl.pallas_call(
        _make_mlgru_scan_kernel(t_blk),
        out_shape=jax.ShapeDtypeStruct((b, t, h), jnp.float32),
        grid_spec=pltpu.PrefetchScalarGridSpec(
            num_scalar_prefetch=0,
            grid=(t // t_blk,),
            in_specs=[spec, spec, spec],
            out_specs=spec,
            scratch_shapes=[pltpu.VMEM((b, h), jnp.float32)],
        ),
        compiler_params=pltpu.CompilerParams(
            dimension_semantics=("arbitrary",),    # true sequential recurrence
            vmem_limit_bytes=VMEM_LIMIT),
        cost_estimate=pl.CostEstimate(
            flops=8 * b * t * h,
            transcendentals=3 * b * t * h,
            bytes_accessed=4 * 4 * b * t * h),
    )(f_lin, c_lin, g_lin)


# ----------------------------------------------------------------------------
# Kernel 3: fused GLU + final rms_norm/quant + ternary output projection,
#           tiled over (rows, vocab).
# ----------------------------------------------------------------------------
def _glu_output_kernel(x_ref, wg_ref, wu_ref, wd_ref, wo_ref, bo_ref,
                       logits_ref, qd_scr, sd_scr):
    # GLU / down-projection depends only on the row tile: compute it once per
    # row tile (first vocab tile) and keep the quantized result in scratch.
    @pl.when(pl.program_id(1) == 0)
    def _():
        q, sc = _quant_rows(_rms_norm(x_ref[...]))           # (TN,H), (TN,1)
        qb = q.astype(jnp.bfloat16)
        g_lin = jnp.dot(qb, wg_ref[...],
                        preferred_element_type=jnp.float32) * sc
        u_lin = jnp.dot(qb, wu_ref[...],
                        preferred_element_type=jnp.float32) * sc
        p = (g_lin * jax.nn.sigmoid(g_lin)) * u_lin          # silu(g) * u, f32
        d = jnp.dot(p, wd_ref[...], preferred_element_type=jnp.float32)
        qd, sd = _quant_rows(_rms_norm(d))
        qd_scr[...] = qd.astype(jnp.bfloat16)
        sd_scr[...] = sd

    logits = (jnp.dot(qd_scr[...], wo_ref[...],
                      preferred_element_type=jnp.float32) * sd_scr[...]
              + bo_ref[...])
    logits_ref[...] = logits.astype(logits_ref.dtype)


def _glu_and_output(o_flat, wg, wu, wd, wo, bo, *, row_blk, v_blk):
    n, h = o_flat.shape
    v = wo.shape[1]
    return pl.pallas_call(
        _glu_output_kernel,
        out_shape=jax.ShapeDtypeStruct((n, v), jnp.float32),
        grid_spec=pltpu.PrefetchScalarGridSpec(
            num_scalar_prefetch=0,
            grid=(n // row_blk, v // v_blk),
            in_specs=[
                pl.BlockSpec((row_blk, h), lambda i, j: (i, 0)),
                pl.BlockSpec((h, h), lambda i, j: (0, 0)),
                pl.BlockSpec((h, h), lambda i, j: (0, 0)),
                pl.BlockSpec((h, h), lambda i, j: (0, 0)),
                pl.BlockSpec((h, v_blk), lambda i, j: (0, j)),
                pl.BlockSpec((1, v_blk), lambda i, j: (0, j)),
            ],
            out_specs=pl.BlockSpec((row_blk, v_blk), lambda i, j: (i, j)),
            scratch_shapes=[pltpu.VMEM((row_blk, h), jnp.bfloat16),
                            pltpu.VMEM((row_blk, 1), jnp.float32)],
        ),
        compiler_params=pltpu.CompilerParams(
            dimension_semantics=("parallel", "arbitrary"),
            vmem_limit_bytes=VMEM_LIMIT),
        cost_estimate=pl.CostEstimate(
            flops=2 * n * h * (3 * h) + 2 * n * h * v,
            transcendentals=n * h + 4 * n,
            bytes_accessed=(4 * n * h + 2 * 2 * h * h + 4 * h * h
                            + 2 * h * v + 4 * v + 4 * n * v)),
    )(o_flat, wg, wu, wd, wo, bo)


# ----------------------------------------------------------------------------
# One-time weight prep (sign/ternarize, transpose, fuse, cast) — hoisted out of
# the per-forward path.
# ----------------------------------------------------------------------------
def prepare_params(params):
    h = params["W_f"].shape[0]
    v = params["W_out"].shape[0]
    w_fcg = jnp.concatenate(
        [jnp.sign(params["W_f"]).T, jnp.sign(params["W_c"]).T,
         jnp.sign(params["W_g"]).T], axis=1).astype(jnp.bfloat16)      # (E, 3H)
    b_fcg = jnp.concatenate(
        [params["b_f"], params["b_c"], params["b_g"]]
    ).reshape(1, 3 * h).astype(jnp.float32)
    return {
        "emb": params["emb"].astype(jnp.float32),
        "w_fcg": w_fcg,
        "b_fcg": b_fcg,
        "wg_glu": jnp.sign(params["W_g_glu"]).T.astype(jnp.bfloat16),  # (H, H)
        "wu_glu": jnp.sign(params["W_u_glu"]).T.astype(jnp.bfloat16),  # (H, H)
        # p_t is *not* quantized in the original model, so keep this dot f32.
        "wd_glu": jnp.sign(params["W_d_glu"]).T.astype(jnp.float32),   # (H, H)
        "w_out": jnp.sign(params["W_out"]).T.astype(jnp.bfloat16),     # (H, V)
        "b_out": params["b_out"].reshape(1, v).astype(jnp.float32),
    }


# ----------------------------------------------------------------------------
# Full model forward (embedding gather = glue, everything else in kernels).
# ----------------------------------------------------------------------------
def matmul_free_lm_forward(input_ids, prep):
    b, t = input_ids.shape
    e = prep["emb"].shape[1]
    h = prep["w_fcg"].shape[1] // 3
    v = prep["w_out"].shape[1]
    n = b * t

    row_blk = _pick_block(n, 256, 8)
    t_blk = _pick_block(t, 16, 8)
    v_blk = _pick_block(v, 1024, 128)

    x = jnp.take(prep["emb"], input_ids, axis=0)              # (B, T, E)
    f_lin, c_lin, g_lin = _gate_preprojection(
        x.reshape(n, e), prep["w_fcg"], prep["b_fcg"], row_blk=row_blk)
    o = _mlgru_scan(f_lin.reshape(b, t, h), c_lin.reshape(b, t, h),
                    g_lin.reshape(b, t, h), t_blk=t_blk)      # (B, T, H)
    logits = _glu_and_output(o.reshape(n, h), prep["wg_glu"], prep["wu_glu"],
                             prep["wd_glu"], prep["w_out"], prep["b_out"],
                             row_blk=row_blk, v_blk=v_blk)    # (N, V)
    return logits.reshape(b, t, v)


# ----------------------------------------------------------------------------
# Pure-JAX reference (mirrors the PyTorch forward exactly) for validation.
# ----------------------------------------------------------------------------
def reference_forward(input_ids, params):
    def rms_norm(x, eps=EPS):
        mean = jnp.mean(x, axis=-1, keepdims=True)
        var = jnp.mean((x - mean) ** 2, axis=-1, keepdims=True)
        return (x - mean) / jnp.sqrt(var + eps)

    def activation_quant(x):
        s = 127.0 / jnp.max(jnp.abs(x), axis=-1, keepdims=True)
        return jnp.clip(jnp.round(s * x), -128.0, 127.0) / s

    x = params["emb"][input_ids]
    B, T, _ = x.shape
    H = params["W_f"].shape[0]
    wf_t = jnp.sign(params["W_f"]).T
    wc_t = jnp.sign(params["W_c"]).T
    wg_t = jnp.sign(params["W_g"]).T

    h = jnp.zeros((B, H), jnp.float32)
    outs = []
    for t in range(T):
        xq = activation_quant(rms_norm(x[:, t, :]))
        f = jax.nn.sigmoid(xq @ wf_t + params["b_f"])
        c_lin = xq @ wc_t + params["b_c"]
        c = c_lin * jax.nn.sigmoid(c_lin)
        g = jax.nn.sigmoid(xq @ wg_t + params["b_g"])
        h = f * h + (1.0 - f) * c
        outs.append(g * h)
    o = jnp.stack(outs, axis=1)

    xq = activation_quant(rms_norm(o))
    g_lin = xq @ jnp.sign(params["W_g_glu"]).T
    u_lin = xq @ jnp.sign(params["W_u_glu"]).T
    p = (g_lin * jax.nn.sigmoid(g_lin)) * u_lin
    d = p @ jnp.sign(params["W_d_glu"]).T

    dq = activation_quant(rms_norm(d))
    return dq @ jnp.sign(params["W_out"]).T + params["b_out"]


# ----------------------------------------------------------------------------
if __name__ == "__main__":
    vocab_size, embed_size, hidden_size = 64, 32, 32
    B, T = 2, 8

    key = jax.random.PRNGKey(0)
    ks = jax.random.split(key, 10)
    k_lin = 1.0 / np.sqrt(hidden_size)

    params = {
        "emb":     jax.random.normal(ks[0], (vocab_size, embed_size), jnp.float32),
        "W_f":     jax.random.normal(ks[1], (hidden_size, embed_size), jnp.float32) * 0.01,
        "W_c":     jax.random.normal(ks[2], (hidden_size, embed_size), jnp.float32) * 0.01,
        "W_g":     jax.random.normal(ks[3], (hidden_size, embed_size), jnp.float32) * 0.01,
        "b_f":     jnp.zeros((hidden_size,), jnp.float32),
        "b_c":     jnp.zeros((hidden_size,), jnp.float32),
        "b_g":     jnp.zeros((hidden_size,), jnp.float32),
        "W_g_glu": jax.random.normal(ks[4], (hidden_size, hidden_size), jnp.float32) * 0.01,
        "W_u_glu": jax.random.normal(ks[5], (hidden_size, hidden_size), jnp.float32) * 0.01,
        "W_d_glu": jax.random.normal(ks[6], (hidden_size, hidden_size), jnp.float32) * 0.01,
        "W_out":   jax.random.uniform(ks[7], (vocab_size, hidden_size), jnp.float32,
                                      -k_lin, k_lin),
        "b_out":   jax.random.uniform(ks[8], (vocab_size,), jnp.float32, -k_lin, k_lin),
    }

    input_ids = jax.random.randint(ks[9], (B, T), 0, vocab_size, dtype=jnp.int32)

    prep = prepare_params(params)                 # one-time weight prep
    fwd = jax.jit(matmul_free_lm_forward)

    logits = jax.block_until_ready(fwd(input_ids, prep))
    ref = jax.block_until_ready(reference_forward(input_ids, params))

    assert logits.shape == (B, T, vocab_size), logits.shape
    assert np.all(np.isfinite(np.asarray(logits)))
    np.testing.assert_allclose(np.asarray(logits), np.asarray(ref),
                               rtol=5e-2, atol=2e-1)

    print("KERNEL_OK")
</pallas_src>

<mosaic_0001>
module attributes {stable_mosaic.version = 11 : i64} {
  func.func @_gates_kernel(%arg0: i32, %arg1: memref<16x32xf32, #tpu.memory_space<vmem>>, %arg2: memref<32x96xbf16, #tpu.memory_space<vmem>>, %arg3: memref<1x96xf32, #tpu.memory_space<vmem>>, %arg4: memref<16x32xf32, #tpu.memory_space<vmem>>, %arg5: memref<16x32xf32, #tpu.memory_space<vmem>>, %arg6: memref<16x32xf32, #tpu.memory_space<vmem>>) attributes {dimension_semantics = [#tpu.dimension_semantics<parallel>], iteration_bounds = array<i64: 1>, scalar_prefetch = 0 : i64, scratch_operands = 0 : i64, tpu.core_type = #tpu.core_type<tc>, window_params = [{transform_indices = @transform_0, window_bounds = array<i64: 16, 32>}, {pipeline_mode = #tpu.pipeline_mode<synchronous>, transform_indices = @transform_1, window_bounds = array<i64: 32, 96>}, {pipeline_mode = #tpu.pipeline_mode<synchronous>, transform_indices = @transform_2, window_bounds = array<i64: 1, 96>}, {transform_indices = @transform_3, window_bounds = array<i64: 16, 32>}, {transform_indices = @transform_4, window_bounds = array<i64: 16, 32>}, {transform_indices = @transform_5, window_bounds = array<i64: 16, 32>}]} {
    %c0 = arith.constant 0 : index
    %c0_0 = arith.constant 0 : index
    %0 = vector.load %arg1[%c0, %c0_0] : memref<16x32xf32, #tpu.memory_space<vmem>>, vector<16x32xf32>
    %cst = arith.constant dense<0.000000e+00> : vector<16xf32>
    %1 = vector.multi_reduction <add>, %0, %cst [1] : vector<16x32xf32> to vector<16xf32>
    %2 = vector.shape_cast %1 : vector<16xf32> to vector<16x1xf32>
    %cst_1 = arith.constant 3.200000e+01 : f32
    %3 = vector.broadcast %cst_1 : f32 to vector<16x1xf32>
    %4 = arith.divf %2, %3 : vector<16x1xf32>
    %5 = vector.broadcast %4 : vector<16x1xf32> to vector<16x32xf32>
    %6 = arith.subf %0, %5 : vector<16x32xf32>
    %7 = arith.mulf %6, %6 : vector<16x32xf32>
    %cst_2 = arith.constant dense<0.000000e+00> : vector<16xf32>
    %8 = vector.multi_reduction <add>, %7, %cst_2 [1] : vector<16x32xf32> to vector<16xf32>
    %9 = vector.shape_cast %8 : vector<16xf32> to vector<16x1xf32>
    %cst_3 = arith.constant 3.200000e+01 : f32
    %10 = vector.broadcast %cst_3 : f32 to vector<16x1xf32>
    %11 = arith.divf %9, %10 : vector<16x1xf32>
    %12 = vector.broadcast %4 : vector<16x1xf32> to vector<16x32xf32>
    %13 = arith.subf %0, %12 : vector<16x32xf32>
    %cst_4 = arith.constant 9.99999993E-9 : f32
    %14 = vector.broadcast %cst_4 : f32 to vector<16x1xf32>
    %15 = arith.addf %11, %14 : vector<16x1xf32>
    %16 = math.rsqrt %15 : vector<16x1xf32>
    %17 = vector.broadcast %16 : vector<16x1xf32> to vector<16x32xf32>
    %18 = arith.mulf %13, %17 : vector<16x32xf32>
    %19 = math.absf %18 : vector<16x32xf32>
    %cst_5 = arith.constant dense<0xFF800000> : vector<16xf32>
    %20 = vector.multi_reduction <maximumf>, %19, %cst_5 [1] : vector<16x32xf32> to vector<16xf32>
    %21 = vector.shape_cast %20 : vector<16xf32> to vector<16x1xf32>
    %cst_6 = arith.constant 1.270000e+02 : f32
    %22 = vector.broadcast %cst_6 : f32 to vector<16x1xf32>
    %23 = arith.divf %22, %21 : vector<16x1xf32>
    %24 = vector.broadcast %23 : vector<16x1xf32> to vector<16x32xf32>
    %25 = arith.mulf %24, %18 : vector<16x32xf32>
    %26 = math.roundeven %25 : vector<16x32xf32>
    %cst_7 = arith.constant -1.280000e+02 : f32
    %cst_8 = arith.constant 1.270000e+02 : f32
    %27 = vector.broadcast %cst_7 : f32 to vector<16x32xf32>
    %28 = arith.maximumf %27, %26 : vector<16x32xf32>
    %29 = vector.broadcast %cst_8 : f32 to vector<16x32xf32>
    %30 = arith.minimumf %29, %28 : vector<16x32xf32>
    %cst_9 = arith.constant 0.00787401571 : f32
    %31 = vector.broadcast %cst_9 : f32 to vector<16x1xf32>
    %32 = arith.mulf %21, %31 : vector<16x1xf32>
    %33 = arith.truncf %30 : vector<16x32xf32> to vector<16x32xbf16>
    %c0_10 = arith.constant 0 : index
    %c0_11 = arith.constant 0 : index
    %34 = vector.load %arg2[%c0_10, %c0_11] : memref<32x96xbf16, #tpu.memory_space<vmem>>, vector<32x96xbf16>
    %cst_12 = arith.constant dense<0.000000e+00> : vector<16x96xf32>
    %35 = tpu.matmul %33, %34, %cst_12 {dimension_numbers = #tpu.dot_dimension_numbers<[1], [0], [0], [1], [0, 0, 1, 1], [], []>} : vector<16x32xbf16>, vector<32x96xbf16>, vector<16x96xf32> -> vector<16x96xf32>
    %36 = vector.broadcast %32 : vector<16x1xf32> to vector<16x96xf32>
    %37 = arith.mulf %35, %36 : vector<16x96xf32>
    %c0_13 = arith.constant 0 : index
    %c0_14 = arith.constant 0 : index
    %38 = vector.load %arg3[%c0_13, %c0_14] : memref<1x96xf32, #tpu.memory_space<vmem>>, vector<1x96xf32>
    %39 = vector.broadcast %38 : vector<1x96xf32> to vector<16x96xf32>
    %40 = arith.addf %37, %39 : vector<16x96xf32>
    %41 = vector.extract_strided_slice %40 {offsets = [0, 0], sizes = [16, 32], strides = [1, 1]} : vector<16x96xf32> to vector<16x32xf32>
    %c0_15 = arith.constant 0 : index
    %c0_16 = arith.constant 0 : index
    %42 = vector.load %arg4[%c0_15, %c0_16] : memref<16x32xf32, #tpu.memory_space<vmem>>, vector<16x32xf32>
    tpu.vector_store %arg4[%c0_15, %c0_16], %41 {strides = array<i32>} : memref<16x32xf32, #tpu.memory_space<vmem>>, vector<16x32xf32>,
    %43 = vector.extract_strided_slice %40 {offsets = [0, 32], sizes = [16, 32], strides = [1, 1]} : vector<16x96xf32> to vector<16x32xf32>
    %c0_17 = arith.constant 0 : index
    %c0_18 = arith.constant 0 : index
    %44 = vector.load %arg5[%c0_17, %c0_18] : memref<16x32xf32, #tpu.memory_space<vmem>>, vector<16x32xf32>
    tpu.vector_store %arg5[%c0_17, %c0_18], %43 {strides = array<i32>} : memref<16x32xf32, #tpu.memory_space<vmem>>, vector<16x32xf32>,
    %45 = vector.extract_strided_slice %40 {offsets = [0, 64], sizes = [16, 32], strides = [1, 1]} : vector<16x96xf32> to vector<16x32xf32>
    %c0_19 = arith.constant 0 : index
    %c0_20 = arith.constant 0 : index
    %46 = vector.load %arg6[%c0_19, %c0_20] : memref<16x32xf32, #tpu.memory_space<vmem>>, vector<16x32xf32>
    tpu.vector_store %arg6[%c0_19, %c0_20], %45 {strides = array<i32>} : memref<16x32xf32, #tpu.memory_space<vmem>>, vector<16x32xf32>,
    return
  }
  func.func @transform_0(%arg0: i32) -> (i32, i32) {
    %c0_i32 = arith.constant 0 : i32
    %c0_i32_0 = arith.constant 0 : i32
    return %arg0, %c0_i32 : i32, i32
  }
  func.func @transform_1(%arg0: i32) -> (i32, i32) {
    %c0_i32 = arith.constant 0 : i32
    %c0_i32_0 = arith.constant 0 : i32
    %c0_i32_1 = arith.constant 0 : i32
    return %c0_i32, %c0_i32_0 : i32, i32
  }
  func.func @transform_2(%arg0: i32) -> (i32, i32) {
    %c0_i32 = arith.constant 0 : i32
    %c0_i32_0 = arith.constant 0 : i32
    %c0_i32_1 = arith.constant 0 : i32
    return %c0_i32, %c0_i32_0 : i32, i32
  }
  func.func @transform_3(%arg0: i32) -> (i32, i32) {
    %c0_i32 = arith.constant 0 : i32
    %c0_i32_0 = arith.constant 0 : i32
    return %arg0, %c0_i32 : i32, i32
  }
  func.func @transform_4(%arg0: i32) -> (i32, i32) {
    %c0_i32 = arith.constant 0 : i32
    %c0_i32_0 = arith.constant 0 : i32
    return %arg0, %c0_i32 : i32, i32
  }
  func.func @transform_5(%arg0: i32) -> (i32, i32) {
    %c0_i32 = arith.constant 0 : i32
    %c0_i32_0 = arith.constant 0 : i32
    return %arg0, %c0_i32 : i32, i32
  }
}

module attributes {stable_mosaic.version = 11 : i64} {
  func.func @kernel(%arg0: i32, %arg1: memref<2x8x32xf32, #tpu.memory_space<vmem>>, %arg2: memref<2x8x32xf32, #tpu.memory_space<vmem>>, %arg3: memref<2x8x32xf32, #tpu.memory_space<vmem>>, %arg4: memref<2x8x32xf32, #tpu.memory_space<vmem>>, %arg5: memref<2x32xf32, #tpu.memory_space<vmem>>) attributes {dimension_semantics = [#tpu.dimension_semantics<arbitrary>], iteration_bounds = array<i64: 1>, scalar_prefetch = 0 : i64, scratch_operands = 1 : i64, tpu.core_type = #tpu.core_type<tc>, window_params = [{transform_indices = @transform_0, window_bounds = array<i64: 2, 8, 32>}, {transform_indices = @transform_1, window_bounds = array<i64: 2, 8, 32>}, {transform_indices = @transform_2, window_bounds = array<i64: 2, 8, 32>}, {transform_indices = @transform_3, window_bounds = array<i64: 2, 8, 32>}]} {
    %c0_i32 = arith.constant 0 : i32
    %0 = arith.cmpi eq, %arg0, %c0_i32 : i32
    %1 = arith.extui %0 : i1 to i32
    %c0_i32_0 = arith.constant 0 : i32
    %2 = arith.cmpi ne, %1, %c0_i32_0 : i32
    scf.if %2 {
      %cst_33 = arith.constant 0.000000e+00 : f32
      %115 = vector.broadcast %cst_33 : f32 to vector<2x32xf32>
      %c0_34 = arith.constant 0 : index
      %c0_35 = arith.constant 0 : index
      %116 = vector.load %arg5[%c0_34, %c0_35] : memref<2x32xf32, #tpu.memory_space<vmem>>, vector<2x32xf32>
      tpu.vector_store %arg5[%c0_34, %c0_35], %115 {strides = array<i32>} : memref<2x32xf32, #tpu.memory_space<vmem>>, vector<2x32xf32>,
    } else {
    }
    %c0 = arith.constant 0 : index
    %c0_1 = arith.constant 0 : index
    %c0_2 = arith.constant 0 : index
    %3 = vector.load %arg1[%c0, %c0_1, %c0_2] : memref<2x8x32xf32, #tpu.memory_space<vmem>>, vector<2x8x32xf32>
    %4 = arith.negf %3 : vector<2x8x32xf32>
    %5 = math.exp %4 : vector<2x8x32xf32>
    %cst = arith.constant 1.000000e+00 : f32
    %6 = vector.broadcast %cst : f32 to vector<2x8x32xf32>
    %7 = arith.addf %6, %5 : vector<2x8x32xf32>
    %8 = arith.divf %6, %7 : vector<2x8x32xf32>
    %c0_3 = arith.constant 0 : index
    %c0_4 = arith.constant 0 : index
    %c0_5 = arith.constant 0 : index
    %9 = vector.load %arg2[%c0_3, %c0_4, %c0_5] : memref<2x8x32xf32, #tpu.memory_space<vmem>>, vector<2x8x32xf32>
    %cst_6 = arith.constant 1.000000e+00 : f32
    %10 = vector.broadcast %cst_6 : f32 to vector<2x8x32xf32>
    %11 = arith.subf %10, %8 : vector<2x8x32xf32>
    %12 = arith.negf %9 : vector<2x8x32xf32>
    %13 = math.exp %12 : vector<2x8x32xf32>
    %cst_7 = arith.constant 1.000000e+00 : f32
    %14 = vector.broadcast %cst_7 : f32 to vector<2x8x32xf32>
    %15 = arith.addf %14, %13 : vector<2x8x32xf32>
    %16 = arith.divf %14, %15 : vector<2x8x32xf32>
    %17 = arith.mulf %9, %16 : vector<2x8x32xf32>
    %18 = arith.mulf %11, %17 : vector<2x8x32xf32>
    %c0_8 = arith.constant 0 : index
    %c0_9 = arith.constant 0 : index
    %c0_10 = arith.constant 0 : index
    %19 = vector.load %arg3[%c0_8, %c0_9, %c0_10] : memref<2x8x32xf32, #tpu.memory_space<vmem>>, vector<2x8x32xf32>
    %20 = arith.negf %19 : vector<2x8x32xf32>
    %21 = math.exp %20 : vector<2x8x32xf32>
    %cst_11 = arith.constant 1.000000e+00 : f32
    %22 = vector.broadcast %cst_11 : f32 to vector<2x8x32xf32>
    %23 = arith.addf %22, %21 : vector<2x8x32xf32>
    %24 = arith.divf %22, %23 : vector<2x8x32xf32>
    %c0_12 = arith.constant 0 : index
    %c0_13 = arith.constant 0 : index
    %25 = vector.load %arg5[%c0_12, %c0_13] : memref<2x32xf32, #tpu.memory_space<vmem>>, vector<2x32xf32>
    %26 = vector.extract_strided_slice %8 {offsets = [0, 0, 0], sizes = [2, 1, 32], strides = [1, 1, 1]} : vector<2x8x32xf32> to vector<2x1x32xf32>
    %27 = vector.shape_cast %26 : vector<2x1x32xf32> to vector<2x32xf32>
    %28 = arith.mulf %27, %25 : vector<2x32xf32>
    %29 = vector.extract_strided_slice %18 {offsets = [0, 0, 0], sizes = [2, 1, 32], strides = [1, 1, 1]} : vector<2x8x32xf32> to vector<2x1x32xf32>
    %30 = vector.shape_cast %29 : vector<2x1x32xf32> to vector<2x32xf32>
    %31 = arith.addf %28, %30 : vector<2x32xf32>
    %32 = vector.extract_strided_slice %24 {offsets = [0, 0, 0], sizes = [2, 1, 32], strides = [1, 1, 1]} : vector<2x8x32xf32> to vector<2x1x32xf32>
    %33 = vector.shape_cast %32 : vector<2x1x32xf32> to vector<2x32xf32>
    %34 = arith.mulf %33, %31 : vector<2x32xf32>
    %35 = vector.shape_cast %34 : vector<2x32xf32> to vector<2x1x32xf32>
    %c0_14 = arith.constant 0 : index
    %c0_15 = arith.constant 0 : index
    %c0_16 = arith.constant 0 : index
    %36 = vector.load %arg4[%c0_14, %c0_15, %c0_16] : memref<2x8x32xf32, #tpu.memory_space<vmem>>, vector<2x1x32xf32>
    tpu.vector_store %arg4[%c0_14, %c0_15, %c0_16], %35 {strides = array<i32>} : memref<2x8x32xf32, #tpu.memory_space<vmem>>, vector<2x1x32xf32>,
    %37 = vector.extract_strided_slice %8 {offsets = [0, 1, 0], sizes = [2, 1, 32], strides = [1, 1, 1]} : vector<2x8x32xf32> to vector<2x1x32xf32>
    %38 = vector.shape_cast %37 : vector<2x1x32xf32> to vector<2x32xf32>
    %39 = arith.mulf %38, %31 : vector<2x32xf32>
    %40 = vector.extract_strided_slice %18 {offsets = [0, 1, 0], sizes = [2, 1, 32], strides = [1, 1, 1]} : vector<2x8x32xf32> to vector<2x1x32xf32>
    %41 = vector.shape_cast %40 : vector<2x1x32xf32> to vector<2x32xf32>
    %42 = arith.addf %39, %41 : vector<2x32xf32>
    %43 = vector.extract_strided_slice %24 {offsets = [0, 1, 0], sizes = [2, 1, 32], strides = [1, 1, 1]} : vector<2x8x32xf32> to vector<2x1x32xf32>
    %44 = vector.shape_cast %43 : vector<2x1x32xf32> to vector<2x32xf32>
    %45 = arith.mulf %44, %42 : vector<2x32xf32>
    %46 = vector.shape_cast %45 : vector<2x32xf32> to vector<2x1x32xf32>
    %c0_17 = arith.constant 0 : index
    %c1 = arith.constant 1 : index
    %c0_18 = arith.constant 0 : index
    %47 = vector.load %arg4[%c0_17, %c1, %c0_18] : memref<2x8x32xf32, #tpu.memory_space<vmem>>, vector<2x1x32xf32>
    tpu.vector_store %arg4[%c0_17, %c1, %c0_18], %46 {strides = array<i32>} : memref<2x8x32xf32, #tpu.memory_space<vmem>>, vector<2x1x32xf32>,
    %48 = vector.extract_strided_slice %8 {offsets = [0, 2, 0], sizes = [2, 1, 32], strides = [1, 1, 1]} : vector<2x8x32xf32> to vector<2x1x32xf32>
    %49 = vector.shape_cast %48 : vector<2x1x32xf32> to vector<2x32xf32>
    %50 = arith.mulf %49, %42 : vector<2x32xf32>
    %51 = vector.extract_strided_slice %18 {offsets = [0, 2, 0], sizes = [2, 1, 32], strides = [1, 1, 1]} : vector<2x8x32xf32> to vector<2x1x32xf32>
    %52 = vector.shape_cast %51 : vector<2x1x32xf32> to vector<2x32xf32>
    %53 = arith.addf %50, %52 : vector<2x32xf32>
    %54 = vector.extract_strided_slice %24 {offsets = [0, 2, 0], sizes = [2, 1, 32], strides = [1, 1, 1]} : vector<2x8x32xf32> to vector<2x1x32xf32>
    %55 = vector.shape_cast %54 : vector<2x1x32xf32> to vector<2x32xf32>
    %56 = arith.mulf %55, %53 : vector<2x32xf32>
    %57 = vector.shape_cast %56 : vector<2x32xf32> to vector<2x1x32xf32>
    %c0_19 = arith.constant 0 : index
    %c2 = arith.constant 2 : index
    %c0_20 = arith.constant 0 : index
    %58 = vector.load %arg4[%c0_19, %c2, %c0_20] : memref<2x8x32xf32, #tpu.memory_space<vmem>>, vector<2x1x32xf32>
    tpu.vector_store %arg4[%c0_19, %c2, %c0_20], %57 {strides = array<i32>} : memref<2x8x32xf32, #tpu.memory_space<vmem>>, vector<2x1x32xf32>,
    %59 = vector.extract_strided_slice %8 {offsets = [0, 3, 0], sizes = [2, 1, 32], strides = [1, 1, 1]} : vector<2x8x32xf32> to vector<2x1x32xf32>
    %60 = vector.shape_cast %59 : vector<2x1x32xf32> to vector<2x32xf32>
    %61 = arith.mulf %60, %53 : vector<2x32xf32>
    %62 = vector.extract_strided_slice %18 {offsets = [0, 3, 0], sizes = [2, 1, 32], strides = [1, 1, 1]} : vector<2x8x32xf32> to vector<2x1x32xf32>
    %63 = vector.shape_cast %62 : vector<2x1x32xf32> to vector<2x32xf32>
    %64 = arith.addf %61, %63 : vector<2x32xf32>
    %65 = vector.extract_strided_slice %24 {offsets = [0, 3, 0], sizes = [2, 1, 32], strides = [1, 1, 1]} : vector<2x8x32xf32> to vector<2x1x32xf32>
    %66 = vector.shape_cast %65 : vector<2x1x32xf32> to vector<2x32xf32>
    %67 = arith.mulf %66, %64 : vector<2x32xf32>
    %68 = vector.shape_cast %67 : vector<2x32xf32> to vector<2x1x32xf32>
    %c0_21 = arith.constant 0 : index
    %c3 = arith.constant 3 : index
    %c0_22 = arith.constant 0 : index
    %69 = vector.load %arg4[%c0_21, %c3, %c0_22] : memref<2x8x32xf32, #tpu.memory_space<vmem>>, vector<2x1x32xf32>
    tpu.vector_store %arg4[%c0_21, %c3, %c0_22], %68 {strides = array<i32>} : memref<2x8x32xf32, #tpu.memory_space<vmem>>, vector<2x1x32xf32>,
    %70 = vector.extract_strided_slice %8 {offsets = [0, 4, 0], sizes = [2, 1, 32], strides = [1, 1, 1]} : vector<2x8x32xf32> to vector<2x1x32xf32>
    %71 = vector.shape_cast %70 : vector<2x1x32xf32> to vector<2x32xf32>
    %72 = arith.mulf %71, %64 : vector<2x32xf32>
    %73 = vector.extract_strided_slice %18 {offsets = [0, 4, 0], sizes = [2, 1, 32], strides = [1, 1, 1]} : vector<2x8x32xf32> to vector<2x1x32xf32>
    %74 = vector.shape_cast %73 : vector<2x1x32xf32> to vector<2x32xf32>
    %75 = arith.addf %72, %74 : vector<2x32xf32>
    %76 = vector.extract_strided_slice %24 {offsets = [0, 4, 0], sizes = [2, 1, 32], strides = [1, 1, 1]} : vector<2x8x32xf32> to vector<2x1x32xf32>
    %77 = vector.shape_cast %76 : vector<2x1x32xf32> to vector<2x32xf32>
    %78 = arith.mulf %77, %75 : vector<2x32xf32>
    %79 = vector.shape_cast %78 : vector<2x32xf32> to vector<2x1x32xf32>
    %c0_23 = arith.constant 0 : index
    %c4 = arith.constant 4 : index
    %c0_24 = arith.constant 0 : index
    %80 = vector.load %arg4[%c0_23, %c4, %c0_24] : memref<2x8x32xf32, #tpu.memory_space<vmem>>, vector<2x1x32xf32>
    tpu.vector_store %arg4[%c0_23, %c4, %c0_24], %79 {strides = array<i32>} : memref<2x8x32xf32, #tpu.memory_space<vmem>>, vector<2x1x32xf32>,
    %81 = vector.extract_strided_slice %8 {offsets = [0, 5, 0], sizes = [2, 1, 32], strides = [1, 1, 1]} : vector<2x8x32xf32> to vector<2x1x32xf32>
    %82 = vector.shape_cast %81 : vector<2x1x32xf32> to vector<2x32xf32>
    %83 = arith.mulf %82, %75 : vector<2x32xf32>
    %84 = vector.extract_strided_slice %18 {offsets = [0, 5, 0], sizes = [2, 1, 32], strides = [1, 1, 1]} : vector<2x8x32xf32> to vector<2x1x32xf32>
    %85 = vector.shape_cast %84 : vector<2x1x32xf32> to vector<2x32xf32>
    %86 = arith.addf %83, %85 : vector<2x32xf32>
    %87 = vector.extract_strided_slice %24 {offsets = [0, 5, 0], sizes = [2, 1, 32], strides = [1, 1, 1]} : vector<2x8x32xf32> to vector<2x1x32xf32>
    %88 = vector.shape_cast %87 : vector<2x1x32xf32> to vector<2x32xf32>
    %89 = arith.mulf %88, %86 : vector<2x32xf32>
    %90 = vector.shape_cast %89 : vector<2x32xf32> to vector<2x1x32xf32>
    %c0_25 = arith.constant 0 : index
    %c5 = arith.constant 5 : index
    %c0_26 = arith.constant 0 : index
    %91 = vector.load %arg4[%c0_25, %c5, %c0_26] : memref<2x8x32xf32, #tpu.memory_space<vmem>>, vector<2x1x32xf32>
    tpu.vector_store %arg4[%c0_25, %c5, %c0_26], %90 {strides = array<i32>} : memref<2x8x32xf32, #tpu.memory_space<vmem>>, vector<2x1x32xf32>,
    %92 = vector.extract_strided_slice %8 {offsets = [0, 6, 0], sizes = [2, 1, 32], strides = [1, 1, 1]} : vector<2x8x32xf32> to vector<2x1x32xf32>
    %93 = vector.shape_cast %92 : vector<2x1x32xf32> to vector<2x32xf32>
    %94 = arith.mulf %93, %86 : vector<2x32xf32>
    %95 = vector.extract_strided_slice %18 {offsets = [0, 6, 0], sizes = [2, 1, 32], strides = [1, 1, 1]} : vector<2x8x32xf32> to vector<2x1x32xf32>
    %96 = vector.shape_cast %95 : vector<2x1x32xf32> to vector<2x32xf32>
    %97 = arith.addf %94, %96 : vector<2x32xf32>
    %98 = vector.extract_strided_slice %24 {offsets = [0, 6, 0], sizes = [2, 1, 32], strides = [1, 1, 1]} : vector<2x8x32xf32> to vector<2x1x32xf32>
    %99 = vector.shape_cast %98 : vector<2x1x32xf32> to vector<2x32xf32>
    %100 = arith.mulf %99, %97 : vector<2x32xf32>
    %101 = vector.shape_cast %100 : vector<2x32xf32> to vector<2x1x32xf32>
    %c0_27 = arith.constant 0 : index
    %c6 = arith.constant 6 : index
    %c0_28 = arith.constant 0 : index
    %102 = vector.load %arg4[%c0_27, %c6, %c0_28] : memref<2x8x32xf32, #tpu.memory_space<vmem>>, vector<2x1x32xf32>
    tpu.vector_store %arg4[%c0_27, %c6, %c0_28], %101 {strides = array<i32>} : memref<2x8x32xf32, #tpu.memory_space<vmem>>, vector<2x1x32xf32>,
    %103 = vector.extract_strided_slice %8 {offsets = [0, 7, 0], sizes = [2, 1, 32], strides = [1, 1, 1]} : vector<2x8x32xf32> to vector<2x1x32xf32>
    %104 = vector.shape_cast %103 : vector<2x1x32xf32> to vector<2x32xf32>
    %105 = arith.mulf %104, %97 : vector<2x32xf32>
    %106 = vector.extract_strided_slice %18 {offsets = [0, 7, 0], sizes = [2, 1, 32], strides = [1, 1, 1]} : vector<2x8x32xf32> to vector<2x1x32xf32>
    %107 = vector.shape_cast %106 : vector<2x1x32xf32> to vector<2x32xf32>
    %108 = arith.addf %105, %107 : vector<2x32xf32>
    %109 = vector.extract_strided_slice %24 {offsets = [0, 7, 0], sizes = [2, 1, 32], strides = [1, 1, 1]} : vector<2x8x32xf32> to vector<2x1x32xf32>
    %110 = vector.shape_cast %109 : vector<2x1x32xf32> to vector<2x32xf32>
    %111 = arith.mulf %110, %108 : vector<2x32xf32>
    %112 = vector.shape_cast %111 : vector<2x32xf32> to vector<2x1x32xf32>
    %c0_29 = arith.constant 0 : index
    %c7 = arith.constant 7 : index
    %c0_30 = arith.constant 0 : index
    %113 = vector.load %arg4[%c0_29, %c7, %c0_30] : memref<2x8x32xf32, #tpu.memory_space<vmem>>, vector<2x1x32xf32>
    tpu.vector_store %arg4[%c0_29, %c7, %c0_30], %112 {strides = array<i32>} : memref<2x8x32xf32, #tpu.memory_space<vmem>>, vector<2x1x32xf32>,
    %c0_31 = arith.constant 0 : index
    %c0_32 = arith.constant 0 : index
    %114 = vector.load %arg5[%c0_31, %c0_32] : memref<2x32xf32, #tpu.memory_space<vmem>>, vector<2x32xf32>
    tpu.vector_store %arg5[%c0_31, %c0_32], %108 {strides = array<i32>} : memref<2x32xf32, #tpu.memory_space<vmem>>, vector<2x32xf32>,
    return
  }
  func.func @transform_0(%arg0: i32) -> (i32, i32, i32) {
    %c0_i32 = arith.constant 0 : i32
    %c0_i32_0 = arith.constant 0 : i32
    %c0_i32_1 = arith.constant 0 : i32
    return %c0_i32, %arg0, %c0_i32_0 : i32, i32, i32
  }
  func.func @transform_1(%arg0: i32) -> (i32, i32, i32) {
    %c0_i32 = arith.constant 0 : i32
    %c0_i32_0 = arith.constant 0 : i32
    %c0_i32_1 = arith.constant 0 : i32
    return %c0_i32, %arg0, %c0_i32_0 : i32, i32, i32
  }
  func.func @transform_2(%arg0: i32) -> (i32, i32, i32) {
    %c0_i32 = arith.constant 0 : i32
    %c0_i32_0 = arith.constant 0 : i32
    %c0_i32_1 = arith.constant 0 : i32
    return %c0_i32, %arg0, %c0_i32_0 : i32, i32, i32
  }
  func.func @transform_3(%arg0: i32) -> (i32, i32, i32) {
    %c0_i32 = arith.constant 0 : i32
    %c0_i32_0 = arith.constant 0 : i32
    %c0_i32_1 = arith.constant 0 : i32
    return %c0_i32, %arg0, %c0_i32_0 : i32, i32, i32
  }
}

module attributes {stable_mosaic.version = 11 : i64} {
  func.func @_glu_output_kernel(%arg0: i32, %arg1: i32, %arg2: memref<16x32xf32, #tpu.memory_space<vmem>>, %arg3: memref<32x32xbf16, #tpu.memory_space<vmem>>, %arg4: memref<32x32xbf16, #tpu.memory_space<vmem>>, %arg5: memref<32x32xf32, #tpu.memory_space<vmem>>, %arg6: memref<32x64xbf16, #tpu.memory_space<vmem>>, %arg7: memref<1x64xf32, #tpu.memory_space<vmem>>, %arg8: memref<16x64xf32, #tpu.memory_space<vmem>>, %arg9: memref<16x32xbf16, #tpu.memory_space<vmem>>, %arg10: memref<16x1xf32, #tpu.memory_space<vmem>>) attributes {dimension_semantics = [#tpu.dimension_semantics<parallel>, #tpu.dimension_semantics<arbitrary>], iteration_bounds = array<i64: 1, 1>, scalar_prefetch = 0 : i64, scratch_operands = 2 : i64, tpu.core_type = #tpu.core_type<tc>, window_params = [{transform_indices = @transform_0, window_bounds = array<i64: 16, 32>}, {pipeline_mode = #tpu.pipeline_mode<synchronous>, transform_indices = @transform_1, window_bounds = array<i64: 32, 32>}, {pipeline_mode = #tpu.pipeline_mode<synchronous>, transform_indices = @transform_2, window_bounds = array<i64: 32, 32>}, {pipeline_mode = #tpu.pipeline_mode<synchronous>, transform_indices = @transform_3, window_bounds = array<i64: 32, 32>}, {transform_indices = @transform_4, window_bounds = array<i64: 32, 64>}, {transform_indices = @transform_5, window_bounds = array<i64: 1, 64>}, {transform_indices = @transform_6, window_bounds = array<i64: 16, 64>}]} {
    %c0_i32 = arith.constant 0 : i32
    %0 = arith.cmpi eq, %arg1, %c0_i32 : i32
    %1 = arith.extui %0 : i1 to i32
    %c0_i32_0 = arith.constant 0 : i32
    %2 = arith.cmpi ne, %1, %c0_i32_0 : i32
    scf.if %2 {
      %c0_10 = arith.constant 0 : index
      %c0_11 = arith.constant 0 : index
      %13 = vector.load %arg2[%c0_10, %c0_11] : memref<16x32xf32, #tpu.memory_space<vmem>>, vector<16x32xf32>
      %cst_12 = arith.constant dense<0.000000e+00> : vector<16xf32>
      %14 = vector.multi_reduction <add>, %13, %cst_12 [1] : vector<16x32xf32> to vector<16xf32>
      %15 = vector.shape_cast %14 : vector<16xf32> to vector<16x1xf32>
      %cst_13 = arith.constant 3.200000e+01 : f32
      %16 = vector.broadcast %cst_13 : f32 to vector<16x1xf32>
      %17 = arith.divf %15, %16 : vector<16x1xf32>
      %18 = vector.broadcast %17 : vector<16x1xf32> to vector<16x32xf32>
      %19 = arith.subf %13, %18 : vector<16x32xf32>
      %20 = arith.mulf %19, %19 : vector<16x32xf32>
      %cst_14 = arith.constant dense<0.000000e+00> : vector<16xf32>
      %21 = vector.multi_reduction <add>, %20, %cst_14 [1] : vector<16x32xf32> to vector<16xf32>
      %22 = vector.shape_cast %21 : vector<16xf32> to vector<16x1xf32>
      %cst_15 = arith.constant 3.200000e+01 : f32
      %23 = vector.broadcast %cst_15 : f32 to vector<16x1xf32>
      %24 = arith.divf %22, %23 : vector<16x1xf32>
      %25 = vector.broadcast %17 : vector<16x1xf32> to vector<16x32xf32>
      %26 = arith.subf %13, %25 : vector<16x32xf32>
      %cst_16 = arith.constant 9.99999993E-9 : f32
      %27 = vector.broadcast %cst_16 : f32 to vector<16x1xf32>
      %28 = arith.addf %24, %27 : vector<16x1xf32>
      %29 = math.rsqrt %28 : vector<16x1xf32>
      %30 = vector.broadcast %29 : vector<16x1xf32> to vector<16x32xf32>
      %31 = arith.mulf %26, %30 : vector<16x32xf32>
      %32 = math.absf %31 : vector<16x32xf32>
      %cst_17 = arith.constant dense<0xFF800000> : vector<16xf32>
      %33 = vector.multi_reduction <maximumf>, %32, %cst_17 [1] : vector<16x32xf32> to vector<16xf32>
      %34 = vector.shape_cast %33 : vector<16xf32> to vector<16x1xf32>
      %cst_18 = arith.constant 1.270000e+02 : f32
      %35 = vector.broadcast %cst_18 : f32 to vector<16x1xf32>
      %36 = arith.divf %35, %34 : vector<16x1xf32>
      %37 = vector.broadcast %36 : vector<16x1xf32> to vector<16x32xf32>
      %38 = arith.mulf %37, %31 : vector<16x32xf32>
      %39 = math.roundeven %38 : vector<16x32xf32>
      %cst_19 = arith.constant -1.280000e+02 : f32
      %cst_20 = arith.constant 1.270000e+02 : f32
      %40 = vector.broadcast %cst_19 : f32 to vector<16x32xf32>
      %41 = arith.maximumf %40, %39 : vector<16x32xf32>
      %42 = vector.broadcast %cst_20 : f32 to vector<16x32xf32>
      %43 = arith.minimumf %42, %41 : vector<16x32xf32>
      %cst_21 = arith.constant 0.00787401571 : f32
      %44 = vector.broadcast %cst_21 : f32 to vector<16x1xf32>
      %45 = arith.mulf %34, %44 : vector<16x1xf32>
      %46 = arith.truncf %43 : vector<16x32xf32> to vector<16x32xbf16>
      %c0_22 = arith.constant 0 : index
      %c0_23 = arith.constant 0 : index
      %47 = vector.load %arg3[%c0_22, %c0_23] : memref<32x32xbf16, #tpu.memory_space<vmem>>, vector<32x32xbf16>
      %cst_24 = arith.constant dense<0.000000e+00> : vector<16x32xf32>
      %48 = tpu.matmul %46, %47, %cst_24 {dimension_numbers = #tpu.dot_dimension_numbers<[1], [0], [0], [1], [0, 0, 1, 1], [], []>} : vector<16x32xbf16>, vector<32x32xbf16>, vector<16x32xf32> -> vector<16x32xf32>
      %49 = vector.broadcast %45 : vector<16x1xf32> to vector<16x32xf32>
      %50 = arith.mulf %48, %49 : vector<16x32xf32>
      %c0_25 = arith.constant 0 : index
      %c0_26 = arith.constant 0 : index
      %51 = vector.load %arg4[%c0_25, %c0_26] : memref<32x32xbf16, #tpu.memory_space<vmem>>, vector<32x32xbf16>
      %cst_27 = arith.constant dense<0.000000e+00> : vector<16x32xf32>
      %52 = tpu.matmul %46, %51, %cst_27 {dimension_numbers = #tpu.dot_dimension_numbers<[1], [0], [0], [1], [0, 0, 1, 1], [], []>} : vector<16x32xbf16>, vector<32x32xbf16>, vector<16x32xf32> -> vector<16x32xf32>
      %53 = vector.broadcast %45 : vector<16x1xf32> to vector<16x32xf32>
      %54 = arith.mulf %52, %53 : vector<16x32xf32>
      %55 = arith.negf %50 : vector<16x32xf32>
      %56 = math.exp %55 : vector<16x32xf32>
      %cst_28 = arith.constant 1.000000e+00 : f32
      %57 = vector.broadcast %cst_28 : f32 to vector<16x32xf32>
      %58 = arith.addf %57, %56 : vector<16x32xf32>
      %59 = arith.divf %57, %58 : vector<16x32xf32>
      %60 = arith.mulf %50, %59 : vector<16x32xf32>
      %61 = arith.mulf %60, %54 : vector<16x32xf32>
      %c0_29 = arith.constant 0 : index
      %c0_30 = arith.constant 0 : index
      %62 = vector.load %arg5[%c0_29, %c0_30] : memref<32x32xf32, #tpu.memory_space<vmem>>, vector<32x32xf32>
      %cst_31 = arith.constant dense<0.000000e+00> : vector<16x32xf32>
      %63 = tpu.matmul %61, %62, %cst_31 {dimension_numbers = #tpu.dot_dimension_numbers<[1], [0], [0], [1], [0, 0, 1, 1], [], []>} : vector<16x32xf32>, vector<32x32xf32>, vector<16x32xf32> -> vector<16x32xf32>
      %cst_32 = arith.constant dense<0.000000e+00> : vector<16xf32>
      %64 = vector.multi_reduction <add>, %63, %cst_32 [1] : vector<16x32xf32> to vector<16xf32>
      %65 = vector.shape_cast %64 : vector<16xf32> to vector<16x1xf32>
      %cst_33 = arith.constant 3.200000e+01 : f32
      %66 = vector.broadcast %cst_33 : f32 to vector<16x1xf32>
      %67 = arith.divf %65, %66 : vector<16x1xf32>
      %68 = vector.broadcast %67 : vector<16x1xf32> to vector<16x32xf32>
      %69 = arith.subf %63, %68 : vector<16x32xf32>
      %70 = arith.mulf %69, %69 : vector<16x32xf32>
      %cst_34 = arith.constant dense<0.000000e+00> : vector<16xf32>
      %71 = vector.multi_reduction <add>, %70, %cst_34 [1] : vector<16x32xf32> to vector<16xf32>
      %72 = vector.shape_cast %71 : vector<16xf32> to vector<16x1xf32>
      %cst_35 = arith.constant 3.200000e+01 : f32
      %73 = vector.broadcast %cst_35 : f32 to vector<16x1xf32>
      %74 = arith.divf %72, %73 : vector<16x1xf32>
      %75 = vector.broadcast %67 : vector<16x1xf32> to vector<16x32xf32>
      %76 = arith.subf %63, %75 : vector<16x32xf32>
      %cst_36 = arith.constant 9.99999993E-9 : f32
      %77 = vector.broadcast %cst_36 : f32 to vector<16x1xf32>
      %78 = arith.addf %74, %77 : vector<16x1xf32>
      %79 = math.rsqrt %78 : vector<16x1xf32>
      %80 = vector.broadcast %79 : vector<16x1xf32> to vector<16x32xf32>
      %81 = arith.mulf %76, %80 : vector<16x32xf32>
      %82 = math.absf %81 : vector<16x32xf32>
      %cst_37 = arith.constant dense<0xFF800000> : vector<16xf32>
      %83 = vector.multi_reduction <maximumf>, %82, %cst_37 [1] : vector<16x32xf32> to vector<16xf32>
      %84 = vector.shape_cast %83 : vector<16xf32> to vector<16x1xf32>
      %cst_38 = arith.constant 1.270000e+02 : f32
      %85 = vector.broadcast %cst_38 : f32 to vector<16x1xf32>
      %86 = arith.divf %85, %84 : vector<16x1xf32>
      %87 = vector.broadcast %86 : vector<16x1xf32> to vector<16x32xf32>
      %88 = arith.mulf %87, %81 : vector<16x32xf32>
      %89 = math.roundeven %88 : vector<16x32xf32>
      %cst_39 = arith.constant -1.280000e+02 : f32
      %cst_40 = arith.constant 1.270000e+02 : f32
      %90 = vector.broadcast %cst_39 : f32 to vector<16x32xf32>
      %91 = arith.maximumf %90, %89 : vector<16x32xf32>
      %92 = vector.broadcast %cst_40 : f32 to vector<16x32xf32>
      %93 = arith.minimumf %92, %91 : vector<16x32xf32>
      %cst_41 = arith.constant 0.00787401571 : f32
      %94 = vector.broadcast %cst_41 : f32 to vector<16x1xf32>
      %95 = arith.mulf %84, %94 : vector<16x1xf32>
      %96 = arith.truncf %93 : vector<16x32xf32> to vector<16x32xbf16>
      %c0_42 = arith.constant 0 : index
      %c0_43 = arith.constant 0 : index
      %97 = vector.load %arg9[%c0_42, %c0_43] : memref<16x32xbf16, #tpu.memory_space<vmem>>, vector<16x32xbf16>
      tpu.vector_store %arg9[%c0_42, %c0_43], %96 {strides = array<i32>} : memref<16x32xbf16, #tpu.memory_space<vmem>>, vector<16x32xbf16>,
      %c0_44 = arith.constant 0 : index
      %c0_45 = arith.constant 0 : index
      %98 = vector.load %arg10[%c0_44, %c0_45] : memref<16x1xf32, #tpu.memory_space<vmem>>, vector<16x1xf32>
      tpu.vector_store %arg10[%c0_44, %c0_45], %95 {strides = array<i32>} : memref<16x1xf32, #tpu.memory_space<vmem>>, vector<16x1xf32>,
    } else {
    }
    %c0 = arith.constant 0 : index
    %c0_1 = arith.constant 0 : index
    %3 = vector.load %arg9[%c0, %c0_1] : memref<16x32xbf16, #tpu.memory_space<vmem>>, vector<16x32xbf16>
    %c0_2 = arith.constant 0 : index
    %c0_3 = arith.constant 0 : index
    %4 = vector.load %arg6[%c0_2, %c0_3] : memref<32x64xbf16, #tpu.memory_space<vmem>>, vector<32x64xbf16>
    %cst = arith.constant dense<0.000000e+00> : vector<16x64xf32>
    %5 = tpu.matmul %3, %4, %cst {dimension_numbers = #tpu.dot_dimension_numbers<[1], [0], [0], [1], [0, 0, 1, 1], [], []>} : vector<16x32xbf16>, vector<32x64xbf16>, vector<16x64xf32> -> vector<16x64xf32>
    %c0_4 = arith.constant 0 : index
    %c0_5 = arith.constant 0 : index
    %6 = vector.load %arg10[%c0_4, %c0_5] : memref<16x1xf32, #tpu.memory_space<vmem>>, vector<16x1xf32>
    %7 = vector.broadcast %6 : vector<16x1xf32> to vector<16x64xf32>
    %8 = arith.mulf %5, %7 : vector<16x64xf32>
    %c0_6 = arith.constant 0 : index
    %c0_7 = arith.constant 0 : index
    %9 = vector.load %arg7[%c0_6, %c0_7] : memref<1x64xf32, #tpu.memory_space<vmem>>, vector<1x64xf32>
    %10 = vector.broadcast %9 : vector<1x64xf32> to vector<16x64xf32>
    %11 = arith.addf %8, %10 : vector<16x64xf32>
    %c0_8 = arith.constant 0 : index
    %c0_9 = arith.constant 0 : index
    %12 = vector.load %arg8[%c0_8, %c0_9] : memref<16x64xf32, #tpu.memory_space<vmem>>, vector<16x64xf32>
    tpu.vector_store %arg8[%c0_8, %c0_9], %11 {strides = array<i32>} : memref<16x64xf32, #tpu.memory_space<vmem>>, vector<16x64xf32>,
    return
  }
  func.func @transform_0(%arg0: i32, %arg1: i32) -> (i32, i32) {
    %c0_i32 = arith.constant 0 : i32
    %c0_i32_0 = arith.constant 0 : i32
    return %arg0, %c0_i32 : i32, i32
  }
  func.func @transform_1(%arg0: i32, %arg1: i32) -> (i32, i32) {
    %c0_i32 = arith.constant 0 : i32
    %c0_i32_0 = arith.constant 0 : i32
    %c0_i32_1 = arith.constant 0 : i32
    return %c0_i32, %c0_i32_0 : i32, i32
  }
  func.func @transform_2(%arg0: i32, %arg1: i32) -> (i32, i32) {
    %c0_i32 = arith.constant 0 : i32
    %c0_i32_0 = arith.constant 0 : i32
    %c0_i32_1 = arith.constant 0 : i32
    return %c0_i32, %c0_i32_0 : i32, i32
  }
  func.func @transform_3(%arg0: i32, %arg1: i32) -> (i32, i32) {
    %c0_i32 = arith.constant 0 : i32
    %c0_i32_0 = arith.constant 0 : i32
    %c0_i32_1 = arith.constant 0 : i32
    return %c0_i32, %c0_i32_0 : i32, i32
  }
  func.func @transform_4(%arg0: i32, %arg1: i32) -> (i32, i32) {
    %c0_i32 = arith.constant 0 : i32
    %c0_i32_0 = arith.constant 0 : i32
    return %c0_i32, %arg1 : i32, i32
  }
  func.func @transform_5(%arg0: i32, %arg1: i32) -> (i32, i32) {
    %c0_i32 = arith.constant 0 : i32
    %c0_i32_0 = arith.constant 0 : i32
    return %c0_i32, %arg1 : i32, i32
  }
  func.func @transform_6(%arg0: i32, %arg1: i32) -> (i32, i32) {
    %c0_i32 = arith.constant 0 : i32
    return %arg0, %arg1 : i32, i32
  }
}

</mosaic_0001>

<bundles_post_ra>
// kernel: matmul_free_lm_forward.4
= control target key start
LH: loop header
LB: loop body
LE: loop exit
PB: predicated region body
PF: predicated region fallthrough
CT: control target
= control target key end

     0   :  { %vm18_vm0 = vcmask 254976   ;;  %v229_v0 = vmov 0.0   ;;  %vm79_vm1 = vcmask 253952   ;;  %vm94_vm2 = vcmask 254977   ;;  %s381_s0 = inlined_call_operand.vmem [shape: f32[2,8,32], index: 0, kind: input, shape index: {}]   ;;  %s382_s1 = inlined_call_operand.vmem [shape: f32[2,8,32], index: 1, kind: input, shape index: {}]   ;;  %s383_s2 = inlined_call_operand.vmem [shape: f32[2,8,32], index: 2, kind: input, shape index: {}]   ;;  %s384_s3 = inlined_call_operand.vmem [shape: f32[2,8,32], index: 3, kind: output, shape index: {}]  }
   0x1   :  { %19 = vst.msk [vmem:[#allocation2] sm:$0x3] %vm18_vm0, %v229_v0  ;;  %v20_v1 = vld [vmem:[%s381_s0] sm:$0xff]  ;;  %v21_v7 = vld [vmem:[%s381_s0 + $0x8] sm:$0xff]  ;;  %vm109_vm3 = vcmask 256002   ;;  %vm124_vm4 = vcmask 257027  }
   0x2   :  { %v34_v2 = vld [vmem:[%s382_s1] sm:$0xff]  ;;  %v198_v4 = vmul.f32 -1.442695, %v20_v1  ;;  %v35_v8 = vld [vmem:[%s382_s1 + $0x8] sm:$0xff]  ;;  %v199_v10 = vmul.f32 -1.442695, %v21_v7 }
   0x3   :  { %v54_v3 = vld [vmem:[%s383_s2] sm:$0xff]  ;;  %v200_v5 = vmul.f32 -1.442695, %v34_v2  ;;  %v55_v9 = vld [vmem:[%s383_s2 + $0x8] sm:$0xff]  ;;  %v201_v11 = vmul.f32 -1.442695, %v35_v8 }
   0x4   :  { %v202_v6 = vmul.f32 -1.442695, %v54_v3  ;;  %205 = vpow2.f32 %v198_v4  ;;  %v203_v12 = vmul.f32 -1.442695, %v55_v9  ;;  %vm139_vm5 = vcmask 258052  }
   0x5   :  { %207 = vpow2.f32 %v200_v5  ;;  %vm154_vm6 = vcmask 259077   ;;  %vm169_vm7 = vcmask 260102   ;;  %vm184_vm8 = vcmask 261127  }
   0x6   :  { %209 = vpow2.f32 %v202_v6 }
   0x7   :  { %211 = vpow2.f32 %v199_v10 }
   0x8   :  { %213 = vpow2.f32 %v201_v11  ;;  %v68_v25 = vld [vmem:[#allocation2] sm:$0x3] }
   0x9   :  { %215 = vpow2.f32 %v203_v12  ;;  %v70_v29 = vrot.slane %v68_v25, 1 }
   0xe   :  { %v206_v13 = vpop.eup %205 }
   0xf   :  { %v208_v14 = vpop.eup %207  ;;  %v28_v15 = vadd.f32 1.0, %v206_v13 }
  0x10   :  { %v210_v16 = vpop.eup %209  ;;  %v44_v17 = vadd.f32 1.0, %v208_v14 }
  0x11   :  { %v212_v18 = vpop.eup %211  ;;  %217 = vrcp.f32 %v28_v15  ;;  %v62_v20 = vadd.f32 1.0, %v210_v16 }
  0x12   :  { %v214_v19 = vpop.eup %213  ;;  %219 = vrcp.f32 %v44_v17  ;;  %v29_v21 = vadd.f32 1.0, %v212_v18 }
  0x13   :  { %v216_v22 = vpop.eup %215  ;;  %v45_v23 = vadd.f32 1.0, %v214_v19 }
  0x14   :  { %221 = vrcp.f32 %v29_v21  ;;  %v63_v24 = vadd.f32 1.0, %v216_v22 }
  0x15   :  { %223 = vrcp.f32 %v45_v23 }
  0x16   :  { %225 = vrcp.f32 %v62_v20 }
  0x17   :  { %227 = vrcp.f32 %v63_v24 }
  0x1b   :  { %v268_v26 = vpop.eup %217 }
  0x1c   :  { %v220_v27 = vpop.eup %219  ;;  %v36_v28 = vsub.f32 1.0, %v268_v26  ;;  %v73_v34 = vmul.f32 %v268_v26, %v68_v25 }
  0x1d   :  { %v50_v30 = vmul.f32 %v220_v27, %v34_v2 }
  0x1e   :  { %v271_v31 = vpop.eup %221 }
  0x1f   :  { %v224_v32 = vpop.eup %223  ;;  %v273_v33 = vmul.f32 %v50_v30, %v36_v28  ;;  %v37_v35 = vsub.f32 1.0, %v271_v31  ;;  %v74_v38 = vmul.f32 %v271_v31, %v70_v29 }
  0x20   :  { %v277_v36 = vpop.eup %225  ;;  %v51_v37 = vmul.f32 %v224_v32, %v35_v8 }
  0x21   :  { %v75_v39 = vadd.f32 %v73_v34, %v273_v33  ;;  %v283_v41 = vpop.eup %227 }
  0x22   :  { %v281_v40 = vmul.f32 %v51_v37, %v37_v35 }
  0x23   :  { %v77_v42 = vmul.f32 %v277_v36, %v75_v39  ;;  %v84_v43 = vrot.slane %v75_v39, 7 }
  0x24   :  { %v76_v44 = vadd.f32 %v74_v38, %v281_v40 }
  0x25   :  { %80 = vst.msk [vmem:[%s384_s3] sm:$0x1] %vm79_vm1, %v77_v42  ;;  %v88_v45 = vmul.f32 %v268_v26, %v84_v43 }
  0x26   :  { %v78_v46 = vmul.f32 %v283_v41, %v76_v44  ;;  %v85_v47 = vrot.slane %v76_v44, 7 }
  0x27   :  { %v90_v48 = vadd.f32 %v88_v45, %v273_v33 }
  0x28   :  { %81 = vst.msk [vmem:[%s384_s3 + $0x8] sm:$0x1] %vm79_vm1, %v78_v46  ;;  %v89_v49 = vmul.f32 %v271_v31, %v85_v47 }
  0x29   :  { %v92_v50 = vmul.f32 %v277_v36, %v90_v48  ;;  %v99_v51 = vrot.slane %v90_v48, 7 }
  0x2a   :  { %v91_v52 = vadd.f32 %v89_v49, %v281_v40 }
  0x2b   :  { %95 = vst.msk [vmem:[%s384_s3] sm:$0x2] %vm94_vm2, %v92_v50  ;;  %v103_v53 = vmul.f32 %v268_v26, %v99_v51 }
  0x2c   :  { %v93_v54 = vmul.f32 %v283_v41, %v91_v52  ;;  %v100_v55 = vrot.slane %v91_v52, 7 }
  0x2d   :  { %v105_v56 = vadd.f32 %v103_v53, %v273_v33 }
  0x2e   :  { %96 = vst.msk [vmem:[%s384_s3 + $0x8] sm:$0x2] %vm94_vm2, %v93_v54  ;;  %v104_v57 = vmul.f32 %v271_v31, %v100_v55 }
  0x2f   :  { %v107_v58 = vmul.f32 %v277_v36, %v105_v56  ;;  %v114_v59 = vrot.slane %v105_v56, 7 }
  0x30   :  { %v106_v60 = vadd.f32 %v104_v57, %v281_v40 }
  0x31   :  { %110 = vst.msk [vmem:[%s384_s3] sm:$0x4] %vm109_vm3, %v107_v58  ;;  %v118_v61 = vmul.f32 %v268_v26, %v114_v59 }
  0x32   :  { %v108_v62 = vmul.f32 %v283_v41, %v106_v60  ;;  %v115_v63 = vrot.slane %v106_v60, 7 }
  0x33   :  { %v120_v0 = vadd.f32 %v118_v61, %v273_v33 }
  0x34   :  { %111 = vst.msk [vmem:[%s384_s3 + $0x8] sm:$0x4] %vm109_vm3, %v108_v62  ;;  %v119_v1 = vmul.f32 %v271_v31, %v115_v63 }
  0x35   :  { %v122_v2 = vmul.f32 %v277_v36, %v120_v0  ;;  %v129_v3 = vrot.slane %v120_v0, 7 }
  0x36   :  { %v121_v4 = vadd.f32 %v119_v1, %v281_v40 }
  0x37   :  { %125 = vst.msk [vmem:[%s384_s3] sm:$0x8] %vm124_vm4, %v122_v2  ;;  %v133_v5 = vmul.f32 %v268_v26, %v129_v3 }
  0x38   :  { %v123_v6 = vmul.f32 %v283_v41, %v121_v4  ;;  %v130_v7 = vrot.slane %v121_v4, 7 }
  0x39   :  { %v135_v8 = vadd.f32 %v133_v5, %v273_v33 }
  0x3a   :  { %126 = vst.msk [vmem:[%s384_s3 + $0x8] sm:$0x8] %vm124_vm4, %v123_v6  ;;  %v134_v9 = vmul.f32 %v271_v31, %v130_v7 }
  0x3b   :  { %v137_v10 = vmul.f32 %v277_v36, %v135_v8  ;;  %v144_v11 = vrot.slane %v135_v8, 7 }
  0x3c   :  { %v136_v12 = vadd.f32 %v134_v9, %v281_v40 }
  0x3d   :  { %140 = vst.msk [vmem:[%s384_s3] sm:$0x10] %vm139_vm5, %v137_v10  ;;  %v148_v13 = vmul.f32 %v268_v26, %v144_v11 }
  0x3e   :  { %v138_v14 = vmul.f32 %v283_v41, %v136_v12  ;;  %v145_v15 = vrot.slane %v136_v12, 7 }
  0x3f   :  { %v150_v16 = vadd.f32 %v148_v13, %v273_v33 }
  0x40   :  { %141 = vst.msk [vmem:[%s384_s3 + $0x8] sm:$0x10] %vm139_vm5, %v138_v14  ;;  %v149_v17 = vmul.f32 %v271_v31, %v145_v15 }
  0x41   :  { %v152_v18 = vmul.f32 %v277_v36, %v150_v16  ;;  %v159_v19 = vrot.slane %v150_v16, 7 }
  0x42   :  { %v151_v20 = vadd.f32 %v149_v17, %v281_v40 }
  0x43   :  { %155 = vst.msk [vmem:[%s384_s3] sm:$0x20] %vm154_vm6, %v152_v18  ;;  %v163_v21 = vmul.f32 %v268_v26, %v159_v19 }
  0x44   :  { %v153_v22 = vmul.f32 %v283_v41, %v151_v20  ;;  %v160_v23 = vrot.slane %v151_v20, 7 }
  0x45   :  { %v165_v24 = vadd.f32 %v163_v21, %v273_v33 }
  0x46   :  { %156 = vst.msk [vmem:[%s384_s3 + $0x8] sm:$0x20] %vm154_vm6, %v153_v22  ;;  %v164_v25 = vmul.f32 %v271_v31, %v160_v23 }
  0x47   :  { %v167_v27 = vmul.f32 %v277_v36, %v165_v24  ;;  %v174_v28 = vrot.slane %v165_v24, 7 }
  0x48   :  { %v166_v29 = vadd.f32 %v164_v25, %v281_v40 }
  0x49   :  { %170 = vst.msk [vmem:[%s384_s3] sm:$0x40] %vm169_vm7, %v167_v27  ;;  %v178_v30 = vmul.f32 %v268_v26, %v174_v28 }
  0x4a   :  { %v168_v32 = vmul.f32 %v283_v41, %v166_v29  ;;  %v175_v34 = vrot.slane %v166_v29, 7 }
  0x4b   :  { %v180_v35 = vadd.f32 %v178_v30, %v273_v33 }
  0x4c   :  { %171 = vst.msk [vmem:[%s384_s3 + $0x8] sm:$0x40] %vm169_vm7, %v168_v32  ;;  %v179_v37 = vmul.f32 %v271_v31, %v175_v34 }
  0x4d   :  { %192 = vst.msk [vmem:[#allocation2 - $0x7] sm:$0x80] %vm184_vm8, %v180_v35  ;;  %v182_v38 = vmul.f32 %v277_v36, %v180_v35 }
  0x4e   :  { %v181_v39 = vadd.f32 %v179_v37, %v281_v40 }
  0x4f   :  { %185 = vst.msk [vmem:[%s384_s3] sm:$0x80] %vm184_vm8, %v182_v38 }
  0x50   :  { %v183_v26 = vmul.f32 %v283_v41, %v181_v39  ;;  %v189_v42 = vrot.slane %v181_v39, 7 }
  0x52   :  { %186 = vst.msk [vmem:[%s384_s3 + $0x8] sm:$0x80] %vm184_vm8, %v183_v26 }
  0x53   :  { %193 = vst.msk [vmem:[#allocation2 + $0x1] sm:$0x1] %vm79_vm1, %v189_v42 }

// kernel: matmul_free_lm_forward.3
= control target key start
LH: loop header
LB: loop body
LE: loop exit
PB: predicated region body
PF: predicated region fallthrough
CT: control target
= control target key end

     0   :  { %vm20_vm0 = vcmask 261120   ;;  %v205_v29 = vmov 0.0   ;;  %vm206_vm1 = vmmov 0   ;;  %s207_s28 = smov 64   ;;  %s208_s29 = smov 96   ;;  %s285_s0 = inlined_call_operand.vmem [shape: f32[16,32], index: 0, kind: input, shape index: {}]   ;;  %s286_s1 = inlined_call_operand.vmem [shape: bf16[32,96], index: 1, kind: input, shape index: {}]   ;;  %s287_s2 = inlined_call_operand.vmem [shape: f32[1,96], index: 2, kind: input, shape index: {}]   ;;  %s288_s3 = inlined_call_operand.vmem [shape: f32[16,32], index: 3, kind: output, shape index: {0}]   ;;  %s289_s5 = inlined_call_operand.vmem [shape: f32[16,32], index: 5, kind: output, shape index: {2}]   ;;  %s290_s4 = inlined_call_operand.vmem [shape: f32[16,32], index: 4, kind: output, shape index: {1}]  }
   0x1   :  { %v18_v0 = vld [vmem:[%s285_s0] sm:$0xff]  ;;  %v19_v1 = vld [vmem:[%s285_s0 + $0x8] sm:$0xff]  ;;  %181 = vmatprep.subr.bf16.mxu0 %v205_v29  ;;  %185 = vmatprep.mubr.msk.bf16.mxu0 %vm206_vm1, %v205_v29 }
   0x2   :  { %v21_v2 = vsel %vm20_vm0, %v18_v0, 0.0  ;;  %v24_v3 = vsel %vm20_vm0, %v19_v1, 0.0  ;;  %v195_v28 = vld [vmem:[%s286_s1] sm:$0xff]   ;;  %v196_v30 = vld [vmem:[%s286_s1 + $0x8] sm:$0xff]  }
   0x3   :  { %22 = vadd.xlane.f32.xlu0 %v21_v2  ;;  %182 = vmatpush3.bf16.msra.mxu0 %v195_v28  ;;  %v177_v48 = vld [vmem:[%s287_s2] ss:$0 sm:$0xff] }
   0x4   :  { %183 = vmatprep.subr.bf16.mxu0 %v205_v29 }
   0x7   :  { %25 = vadd.xlane.f32.xlu0 %v24_v3  ;;  %184 = vmatpush3.bf16.msra.mxu0 %v196_v30 }
  0x90   :  { %v23_v4 = vpop.xlane.xlu0 %22 }
  0x91   :  { %v28_v5 = vmul.f32 0.03125, %v23_v4 }
  0x93   :  { %v30_v6 = vsub.f32 %v18_v0, %v28_v5 }
  0x94   :  { %v26_v7 = vpop.xlane.xlu0 %25 }
  0x95   :  { %v29_v8 = vmul.f32 0.03125, %v26_v7  ;;  %v32_v9 = vmul.f32 %v30_v6, %v30_v6 }
  0x97   :  { %v31_v10 = vsub.f32 %v19_v1, %v29_v8  ;;  %v34_v11 = vsel %vm20_vm0, %v32_v9, 0.0 }
  0x98   :  { %35 = vadd.xlane.f32.xlu1 %v34_v11 }
  0x99   :  { %v33_v12 = vmul.f32 %v31_v10, %v31_v10 }
  0x9b   :  { %v37_v13 = vsel %vm20_vm0, %v33_v12, 0.0 }
  0x9c   :  { %38 = vadd.xlane.f32.xlu1 %v37_v13 }
 0x125   :  { %v36_v14 = vpop.xlane.xlu1 %35 }
 0x126   :  { %v40_v15 = vmul.f32 0.03125, %v36_v14 }
 0x128   :  { %v42_v16 = vadd.f32 1e-08, %v40_v15 }
 0x129   :  { %v39_v17 = vpop.xlane.xlu1 %38 }
 0x12a   :  { %197 = vrsqrt.f32 %v42_v16  ;;  %v41_v18 = vmul.f32 0.03125, %v39_v17 }
 0x12c   :  { %v43_v19 = vadd.f32 1e-08, %v41_v18 }
 0x12e   :  { %199 = vrsqrt.f32 %v43_v19 }
 0x134   :  { %v198_v20 = vpop.eup %197 }
 0x135   :  { %v46_v21 = vmul.f32 %v198_v20, %v30_v6 }
 0x137   :  { %v48_v22 = vand.u32 2147483647, %v46_v21 }
 0x138   :  { %v200_v23 = vpop.eup %199 }
 0x139   :  { %v50_v24 = vsel %vm20_vm0, %v48_v22, -inf  ;;  %v47_v25 = vmul.f32 %v200_v23, %v31_v10 }
 0x13a   :  { %51 = vmax.xlane.f32.xlu0 %v50_v24 }
 0x13b   :  { %v49_v26 = vand.u32 2147483647, %v47_v25 }
 0x13d   :  { %v53_v27 = vsel %vm20_vm0, %v49_v26, -inf }
 0x13e   :  { %54 = vmax.xlane.f32.xlu1 %v53_v27 }
 0x1c7   :  { %v52_v31 = vpop.xlane.xlu0 %51 }
 0x1c8   :  { %201 = vrcp.f32 %v52_v31  ;;  %v68_v46 = vmul.f32 0.007874016, %v52_v31 }
 0x1cb   :  { %v55_v32 = vpop.xlane.xlu1 %54 }
 0x1cc   :  { %203 = vrcp.f32 %v55_v32  ;;  %v69_v49 = vmul.f32 0.007874016, %v55_v32 }
 0x1d2   :  { %v202_v33 = vpop.eup %201 }
 0x1d3   :  { %v57_v34 = vmul.f32 127.0, %v202_v33 }
 0x1d5   :  { %v60_v35 = vmul.f32 %v57_v34, %v46_v21 }
 0x1d6   :  { %v204_v36 = vpop.eup %203 }
 0x1d7   :  { %v189_v37 = vround.rtne.f32 %v60_v35  ;;  %v59_v38 = vmul.f32 127.0, %v204_v36 }
 0x1d9   :  { %v61_v39 = vmul.f32 %v59_v38, %v47_v25  ;;  %v64_v40 = vmax.f32 %v189_v37, -128.0 }
 0x1db   :  { %v190_v41 = vround.rtne.f32 %v61_v39  ;;  %v66_v43 = vmin.f32 %v64_v40, 127.0 }
 0x1dd   :  { %v65_v42 = vmax.f32 %v190_v41, -128.0 }
 0x1df   :  { %v67_v44 = vmin.f32 %v65_v42, 127.0 }
 0x1e1   :  { %v70_v45 = vpack.c.bf16 %v67_v44, %v66_v43 }
 0x1e3   :  { %186 = vmatmul.mubr.msk.bf16.vlgmr.msra.gmra.mrb[0].mxu0 %vm20_vm0, %v70_v45 }
 0x2b6   :  { %v124_v47 = vpop.f32.mrb[0].mxu0 }
 0x2b7   :  { %v131_v50 = vmul.f32 %v124_v47, %v68_v46  ;;  %v187_v51 = vpop.f32.mrb[1].mxu0 }
 0x2b8   :  { %v127_v52 = vpop.f32.mrb[2].mxu0 }
 0x2b9   :  { %v140_v53 = vadd.f32 %v177_v48, %v131_v50  ;;  %v132_v54 = vmul.f32 %v127_v52, %v69_v49  ;;  %v188_v55 = vpop.f32.mrb[3].mxu0 }
 0x2bb   :  { %142 = vst.msk [vmem:[%s288_s3] sm:$0xff] %vm20_vm0, %v140_v53  ;;  %v141_v56 = vadd.f32 %v177_v48, %v132_v54  ;;  %154 = vrot.lane.b32.xlu1 %v140_v53, %s207_s28  ;;  %146 = vrot.lane.b32.xlu0 %v140_v53, %s208_s29 }
 0x2bd   :  { %143 = vst.msk [vmem:[%s288_s3 + $0x8] sm:$0xff] %vm20_vm0, %v141_v56 }
 0x2bf   :  { %148 = vrot.lane.b32.xlu1 %v141_v56, %s208_s29 }
 0x2c3   :  { %156 = vrot.lane.b32.xlu1 %v141_v56, %s207_s28 }
 0x32d   :  { %v155_v57 = vpop.permute.xlu1 %154  ;;  %v147_v58 = vpop.permute.xlu0 %146 }
 0x32e   :  { %160 = vst.msk [vmem:[%s289_s5] sm:$0xff] %vm20_vm0, %v155_v57  ;;  %152 = vst.msk [vmem:[%s290_s4] sm:$0xff] %vm20_vm0, %v147_v58 }
 0x331   :  { %v149_v59 = vpop.permute.xlu1 %148 }
 0x332   :  { %153 = vst.msk [vmem:[%s290_s4 + $0x8] sm:$0xff] %vm20_vm0, %v149_v59 }
 0x335   :  { %v157_v60 = vpop.permute.xlu1 %156 }
 0x336   :  { %161 = vst.msk [vmem:[%s289_s5 + $0x8] sm:$0xff] %vm20_vm0, %v157_v60 }

// kernel: matmul_free_lm_forward.5
= control target key start
LH: loop header
LB: loop body
LE: loop exit
PB: predicated region body
PF: predicated region fallthrough
CT: control target
= control target key end

     0   :  { %vm31_vm0 = vcmask 261120   ;;  %s721_s0 = inlined_call_operand.vmem [shape: f32[16,32], index: 0, kind: input, shape index: {}]   ;;  %s722_s1 = inlined_call_operand.vmem [shape: bf16[32,32], index: 1, kind: input, shape index: {}]   ;;  %s723_s2 = inlined_call_operand.vmem [shape: bf16[32,32], index: 2, kind: input, shape index: {}]   ;;  %s724_s3 = inlined_call_operand.vmem [shape: f32[32,32], index: 3, kind: input, shape index: {}]   ;;  %s725_s4 = inlined_call_operand.vmem [shape: bf16[32,64], index: 4, kind: input, shape index: {}]   ;;  %s726_s5 = inlined_call_operand.vmem [shape: f32[1,64], index: 5, kind: input, shape index: {}]   ;;  %s727_s6 = inlined_call_operand.hbm [shape: f32[16,64], index: 6, kind: output, shape index: {}]  }
   0x1   :  { %v29_v0 = vld [vmem:[%s721_s0] sm:$0xff]  ;;  %v30_v1 = vld [vmem:[%s721_s0 + $0x8] sm:$0xff] }
   0x2   :  { %v32_v2 = vsel %vm31_vm0, %v29_v0, 0.0  ;;  %v35_v3 = vsel %vm31_vm0, %v30_v1, 0.0 }
   0x3   :  { %33 = vadd.xlane.f32.xlu0 %v32_v2 }
   0x4   :  { %11 = vsyncpa [#allocation5], 0  ;;  %v545_v28 = vld [vmem:[%s722_s1] sm:$0xff]   ;;  %v599_v30 = vmov 0.0   ;;  %v547_v31 = vld [vmem:[%s722_s1 + $0x8] sm:$0xff]   ;;  %vm600_vm1 = vmmov 0  }
   0x5   :  { %v546_v29 = vld [vmem:[%s723_s2] sm:$0xff]   ;;  %490 = vmatprep.subr.bf16.mxu0 %v599_v30  ;;  %498 = vmatprep.subr.bf16.mxu1 %v599_v30  ;;  %v548_v32 = vld [vmem:[%s723_s2 + $0x8] sm:$0xff]   ;;  %v221_v51 = vld [vmem:[%s724_s3 + $0x10] sm:$0xff]  ;;  %vm354_vm2 = vcmask 7168   ;;  %s602_s18 = smov [#allocation4]   ;;  %vm442_vm3 = vcmask 523264  }
   0x6   :  { %491 = vmatpush3.bf16.msra.mxu0 %v545_v28  ;;  %499 = vmatpush3.bf16.msra.mxu1 %v546_v29  ;;  %v219_v48 = vld [vmem:[%s724_s3] sm:$0xff]  ;;  %v220_v49 = vld [vmem:[%s724_s3 + $0x8] sm:$0xff]  ;;  %v222_v52 = vld [vmem:[%s724_s3 + $0x18] sm:$0xff]  ;;  %s450_s19 = sshll.u32 %s602_s18, 4  ;;  %s451_s19 = int_to_ptr.vmem [resolvable:$true] %s450_s19 }
   0x7   :  { %36 = vadd.xlane.f32.xlu0 %v35_v3  ;;  %492 = vmatprep.subr.bf16.mxu0 %v599_v30  ;;  %v525_v50 = vpack.c.bf16 %v220_v49, %v219_v48  ;;  %v529_v53 = vpack.c.bf16 %v222_v52, %v221_v51  ;;  %s575_s20 = scalar_lea.vmem %s451_s19, 256  ;;  %p580_p1 = scmp.lt.s32.totalorder %s451_s19, %s451_s19 }
   0x8   :  { %500 = vmatprep.subr.bf16.mxu1 %v599_v30  ;;  %494 = vmatprep.mubr.msk.bf16.mxu0 %vm600_vm1, %v599_v30  ;;  %p576_p0 = scmp.ne.s32.totalorder %s451_s19, %s575_s20  ;;  %p581_p2 = scmp.lt.s32.totalorder %s575_s20, %s575_s20 }
   0x9   :  { %502 = vmatprep.mubr.msk.bf16.mxu1 %vm600_vm1, %v599_v30 }
   0xa   :  { %493 = vmatpush3.bf16.msra.mxu0 %v547_v31  ;;  %501 = vmatpush3.bf16.msra.mxu1 %v548_v32  ;;  %p582_p3 = por %p581_p2, %p580_p1 }
   0xb   :  { %517 = vmatprep.subr.bf16.mxu1 %v599_v30  ;;  %526 = vmatprep.subr.bf16.mxu0 %v525_v50 }
   0xc   :  { %p583_p4 = pnand %p582_p3, %p576_p0 }
  0x90   :  { %v34_v4 = vpop.xlane.xlu0 %33 }
  0x91   :  { %v39_v5 = vmul.f32 0.03125, %v34_v4 }
  0x93   :  { %v41_v6 = vsub.f32 %v29_v0, %v39_v5 }
  0x94   :  { %v37_v7 = vpop.xlane.xlu0 %36 }
  0x95   :  { %v40_v8 = vmul.f32 0.03125, %v37_v7  ;;  %v43_v9 = vmul.f32 %v41_v6, %v41_v6 }
  0x97   :  { %v42_v10 = vsub.f32 %v30_v1, %v40_v8  ;;  %v45_v11 = vsel %vm31_vm0, %v43_v9, 0.0 }
  0x98   :  { %46 = vadd.xlane.f32.xlu1 %v45_v11 }
  0x99   :  { %v44_v12 = vmul.f32 %v42_v10, %v42_v10 }
  0x9b   :  { %v48_v13 = vsel %vm31_vm0, %v44_v12, 0.0 }
  0x9c   :  { %49 = vadd.xlane.f32.xlu1 %v48_v13 }
 0x125   :  { %v47_v14 = vpop.xlane.xlu1 %46 }
 0x126   :  { %v51_v15 = vmul.f32 0.03125, %v47_v14 }
 0x128   :  { %v53_v16 = vadd.f32 1e-08, %v51_v15 }
 0x129   :  { %v50_v17 = vpop.xlane.xlu1 %49 }
 0x12a   :  { %551 = vrsqrt.f32 %v53_v16  ;;  %v52_v18 = vmul.f32 0.03125, %v50_v17 }
 0x12c   :  { %v54_v19 = vadd.f32 1e-08, %v52_v18 }
 0x12e   :  { %553 = vrsqrt.f32 %v54_v19 }
 0x134   :  { %v552_v20 = vpop.eup %551 }
 0x135   :  { %v57_v21 = vmul.f32 %v552_v20, %v41_v6 }
 0x137   :  { %v59_v22 = vand.u32 2147483647, %v57_v21 }
 0x138   :  { %v554_v23 = vpop.eup %553 }
 0x139   :  { %v61_v24 = vsel %vm31_vm0, %v59_v22, -inf  ;;  %v58_v25 = vmul.f32 %v554_v23, %v42_v10 }
 0x13a   :  { %62 = vmax.xlane.f32.xlu0 %v61_v24 }
 0x13b   :  { %v60_v26 = vand.u32 2147483647, %v58_v25 }
 0x13d   :  { %v64_v27 = vsel %vm31_vm0, %v60_v26, -inf }
 0x13e   :  { %65 = vmax.xlane.f32.xlu1 %v64_v27 }
 0x1c7   :  { %v63_v33 = vpop.xlane.xlu0 %62 }
 0x1c8   :  { %555 = vrcp.f32 %v63_v33  ;;  %v79_v54 = vmul.f32 0.007874016, %v63_v33 }
 0x1cb   :  { %v66_v34 = vpop.xlane.xlu1 %65 }
 0x1cc   :  { %557 = vrcp.f32 %v66_v34  ;;  %v80_v57 = vmul.f32 0.007874016, %v66_v34 }
 0x1d2   :  { %v556_v35 = vpop.eup %555 }
 0x1d3   :  { %v68_v36 = vmul.f32 127.0, %v556_v35 }
 0x1d5   :  { %v71_v37 = vmul.f32 %v68_v36, %v57_v21 }
 0x1d6   :  { %v558_v38 = vpop.eup %557 }
 0x1d7   :  { %v533_v39 = vround.rtne.f32 %v71_v37  ;;  %v70_v40 = vmul.f32 127.0, %v558_v38 }
 0x1d9   :  { %v72_v41 = vmul.f32 %v70_v40, %v58_v25  ;;  %v75_v42 = vmax.f32 %v533_v39, -128.0 }
 0x1db   :  { %v534_v43 = vround.rtne.f32 %v72_v41  ;;  %v77_v45 = vmin.f32 %v75_v42, 127.0 }
 0x1dd   :  { %v76_v44 = vmax.f32 %v534_v43, -128.0 }
 0x1df   :  { %v78_v46 = vmin.f32 %v76_v44, 127.0 }
 0x1e1   :  { %v81_v47 = vpack.c.bf16 %v78_v46, %v77_v45  ;;  %v601_v45 = vmov 0   ;;  %v549_v46 = vld [vmem:[%s725_s4] sm:$0xff]  }
 0x1e2   :  { %544 = vset.pattern.permute.xlu1 %v601_v45  ;;  %543 = vset.pattern.permute.xlu0 %v601_v45 }
 0x1e3   :  { %495 = vmatmul.mubr.msk.bf16.vlgmr.msra.gmra.mrb[0].mxu0 %vm31_vm0, %v81_v47  ;;  %503 = vmatmul.mubr.msk.bf16.vlgmr.msra.gmra.mrb[0].mxu1 %vm31_vm0, %v81_v47  ;;  %v550_v47 = vld [vmem:[%s725_s4 + $0x8] sm:$0xff]  }
 0x1e4   :  { %521 = vmatprep.mubr.msk.bf16.mxu1 %vm600_vm1, %v599_v30  ;;  %528 = vmatpush3.bf16.msra.mxu0 %v525_v50 }
 0x1e5   :  { %530 = vmatprep.subr.bf16.mxu0 %v529_v53  ;;  %518 = vmatpush3.bf16.msra.mxu1 %v549_v46 }
 0x1e6   :  { %519 = vmatprep.subr.bf16.mxu1 %v599_v30 }
 0x1e8   :  { %532 = vmatpush3.bf16.msra.mxu0 %v529_v53 }
 0x1e9   :  { %520 = vmatpush3.bf16.msra.mxu1 %v550_v47 }
 0x2b6   :  { %v135_v55 = vpop.f32.mrb[0].mxu0  ;;  %v194_v56 = vpop.f32.mrb[0].mxu1 }
 0x2b7   :  { %v142_v58 = vmul.f32 %v135_v55, %v79_v54  ;;  %v496_v59 = vpop.f32.mrb[1].mxu0  ;;  %v504_v60 = vpop.f32.mrb[1].mxu1  ;;  %v201_v10 = vmul.f32 %v194_v56, %v79_v54 }
 0x2b8   :  { %v138_v61 = vpop.f32.mrb[2].mxu0  ;;  %v197_v62 = vpop.f32.mrb[2].mxu1 }
 0x2b9   :  { %v467_v63 = vmul.f32 -1.442695, %v142_v58  ;;  %v143_v0 = vmul.f32 %v138_v61, %v80_v57  ;;  %v497_v1 = vpop.f32.mrb[3].mxu0  ;;  %v505_v2 = vpop.f32.mrb[3].mxu1  ;;  %v202_v14 = vmul.f32 %v197_v62, %v80_v57 }
 0x2bb   :  { %559 = vpow2.f32 %v467_v63  ;;  %v468_v3 = vmul.f32 -1.442695, %v143_v0 }
 0x2bd   :  { %561 = vpow2.f32 %v468_v3 }
 0x2c5   :  { %v560_v4 = vpop.eup %559 }
 0x2c6   :  { %v209_v5 = vadd.f32 1.0, %v560_v4 }
 0x2c7   :  { %v562_v6 = vpop.eup %561 }
 0x2c8   :  { %563 = vrcp.f32 %v209_v5  ;;  %v210_v7 = vadd.f32 1.0, %v562_v6  ;;  %v474_v5 = vld [vmem:[%s726_s5] ss:$0 sm:$0xff] }
 0x2ca   :  { %565 = vrcp.f32 %v210_v7 }
 0x2d2   :  { %v564_v8 = vpop.eup %563 }
 0x2d3   :  { %v215_v9 = vmul.f32 %v564_v8, %v142_v58 }
 0x2d4   :  { %v566_v11 = vpop.eup %565 }
 0x2d5   :  { %v217_v12 = vmul.f32 %v215_v9, %v201_v10  ;;  %v216_v13 = vmul.f32 %v566_v11, %v143_v0 }
 0x2d7   :  { %v218_v15 = vmul.f32 %v216_v13, %v202_v14  ;;  %514 = vmatprep.mubr.msk.f32.mxu0 %vm31_vm0, %v217_v12 }
 0x2d9   :  { %515 = vmatmul.mubr.msk.f32.vlgmr.msra.gmra.mrb[4].mxu0 %vm31_vm0, %v218_v15 }
 0x3ac   :  { %v516_v16 = vpop.f32.mrb[4].mxu0 }
 0x3ad   :  { %v295_v17 = vpop.f32.mrb[5].mxu0  ;;  %v307_v18 = vsel %vm31_vm0, %v516_v16, 0.0 }
 0x3ae   :  { %308 = vadd.xlane.f32.xlu1 %v307_v18  ;;  %v304_v19 = vsel %vm31_vm0, %v295_v17, 0.0 }
 0x3af   :  { %305 = vadd.xlane.f32.xlu0 %v304_v19 }
 0x43b   :  { %v309_v20 = vpop.xlane.xlu1 %308 }
 0x43c   :  { %v311_v21 = vmul.f32 0.03125, %v309_v20  ;;  %v306_v22 = vpop.xlane.xlu0 %305 }
 0x43d   :  { %v310_v23 = vmul.f32 0.03125, %v306_v22 }
 0x43e   :  { %v313_v24 = vsub.f32 %v516_v16, %v311_v21 }
 0x43f   :  { %v312_v25 = vsub.f32 %v295_v17, %v310_v23 }
 0x440   :  { %v315_v26 = vmul.f32 %v313_v24, %v313_v24 }
 0x441   :  { %v314_v27 = vmul.f32 %v312_v25, %v312_v25 }
 0x442   :  { %v319_v28 = vsel %vm31_vm0, %v315_v26, 0.0 }
 0x443   :  { %320 = vadd.xlane.f32.xlu1 %v319_v28  ;;  %v316_v29 = vsel %vm31_vm0, %v314_v27, 0.0 }
 0x444   :  { %317 = vadd.xlane.f32.xlu0 %v316_v29 }
 0x4d0   :  { %v321_v31 = vpop.xlane.xlu1 %320 }
 0x4d1   :  { %v323_v32 = vmul.f32 0.03125, %v321_v31  ;;  %v318_v33 = vpop.xlane.xlu0 %317 }
 0x4d2   :  { %v322_v34 = vmul.f32 0.03125, %v318_v33 }
 0x4d3   :  { %v325_v35 = vadd.f32 1e-08, %v323_v32 }
 0x4d4   :  { %v324_v36 = vadd.f32 1e-08, %v322_v34 }
 0x4d5   :  { %567 = vrsqrt.f32 %v325_v35 }
 0x4d6   :  { %569 = vrsqrt.f32 %v324_v36 }
 0x4df   :  { %v568_v37 = vpop.eup %567 }
 0x4e0   :  { %v570_v38 = vpop.eup %569  ;;  %v329_v39 = vmul.f32 %v568_v37, %v313_v24 }
 0x4e1   :  { %v328_v40 = vmul.f32 %v570_v38, %v312_v25 }
 0x4e2   :  { %v331_v41 = vand.u32 2147483647, %v329_v39 }
 0x4e3   :  { %v330_v42 = vand.u32 2147483647, %v328_v40 }
 0x4e4   :  { %v335_v43 = vsel %vm31_vm0, %v331_v41, -inf }
 0x4e5   :  { %336 = vmax.xlane.f32.xlu1 %v335_v43  ;;  %v332_v44 = vsel %vm31_vm0, %v330_v42, -inf }
 0x4e6   :  { %333 = vmax.xlane.f32.xlu0 %v332_v44 }
 0x572   :  { %v337_v48 = vpop.xlane.xlu1 %336 }
 0x573   :  { %571 = vrcp.f32 %v337_v48  ;;  %v351_v49 = vmul.f32 0.007874016, %v337_v48  ;;  %v334_v50 = vpop.xlane.xlu0 %333 }
 0x574   :  { %573 = vrcp.f32 %v334_v50  ;;  %v350_v51 = vmul.f32 0.007874016, %v334_v50 }
 0x575   :  { %356 = vst.msk [vmem:[#allocation3 + $0x8] sm:$0xff] %vm354_vm2, %v351_v49 }
 0x576   :  { %355 = vst.msk [vmem:[#allocation3] sm:$0xff] %vm354_vm2, %v350_v51 }
 0x57c   :  { %v420_v52 = vld [vmem:[#allocation3 + $0x8] sm:$0xff] }
 0x57d   :  { %v572_v53 = vpop.eup %571  ;;  %428 = vperm.xlu1 %544, %v420_v52   ;;  %v419_v54 = vld [vmem:[#allocation3] sm:$0xff] }
 0x57e   :  { %v574_v55 = vpop.eup %573  ;;  %v341_v56 = vmul.f32 127.0, %v572_v53  ;;  %423 = vperm.xlu0 %543, %v419_v54  }
 0x57f   :  { %v339_v57 = vmul.f32 127.0, %v574_v55 }
 0x580   :  { %v343_v58 = vmul.f32 %v341_v56, %v329_v39 }
 0x581   :  { %v342_v30 = vmul.f32 %v339_v57, %v328_v40 }
 0x582   :  { %v536_v59 = vround.rtne.f32 %v343_v58 }
 0x583   :  { %v535_v60 = vround.rtne.f32 %v342_v30 }
 0x584   :  { %v347_v61 = vmax.f32 %v536_v59, -128.0 }
 0x585   :  { %v346_v62 = vmax.f32 %v535_v60, -128.0 }
 0x586   :  { %v349_v63 = vmin.f32 %v347_v61, 127.0 }
 0x587   :  { %v348_v0 = vmin.f32 %v346_v62, 127.0 }
 0x589   :  { %v352_v1 = vpack.c.bf16 %v349_v63, %v348_v0 }
 0x58b   :  { %353 = vst.msk [vmem:[#allocation2] sm:$0xff] %vm31_vm0, %v352_v1 }
 0x592   :  { %v357_v2 = vld [vmem:[#allocation2] sm:$0xff] }
 0x593   :  { %522 = vmatmul.mubr.msk.bf16.vlgmr.msra.gmra.mrb[4].mxu1 %vm31_vm0, %v357_v2 }
 0x5fc   :  { %v429_v8 = vpop.permute.xlu1 %428 }
 0x5fd   :  { %v424_v3 = vpop.permute.xlu0 %423 }
 0x666   :  { %v412_v4 = vpop.f32.mrb[4].mxu1 }
 0x667   :  { %v431_v6 = vmul.f32 %v424_v3, %v412_v4  ;;  %v523_v7 = vpop.f32.mrb[5].mxu1 }
 0x668   :  { %v415_v9 = vpop.f32.mrb[6].mxu1 }
 0x669   :  { %v440_v10 = vadd.f32 %v474_v5, %v431_v6  ;;  %v432_v11 = vmul.f32 %v429_v8, %v415_v9  ;;  %v524_v12 = vpop.f32.mrb[7].mxu1 }
 0x66b   :  { %443 = vst.msk [vmem:[#allocation4] sm:$0xff] %vm442_vm3, %v440_v10  ;;  %v441_v13 = vadd.f32 %v474_v5, %v432_v11 }
 0x66d   :  { %444 = vst.msk [vmem:[#allocation4 + $0x8] sm:$0xff] %vm442_vm3, %v441_v13 }
 0x66e   :  { %586 = shalt.err (!%p583_p4)
}
 0x66f   :  { %s587_s22 = scalar_lea.hbm %s727_s6, 256 }
 0x670   :  { %p588_p5 = scmp.ne.s32.totalorder %s727_s6, %s587_s22  ;;  %p591_p6 = scmp.lt.u32.totalorder %s587_s22, %s727_s6 }
 0x672   :  { %p593_p7 = pnand %p591_p6, %p588_p5 }
 0x674   :  { %596 = shalt.err (!%p593_p7)
}
 0x675   :  { %s603_s26 = smov 128   ;;  %s604_s27 = smov 8  }
 0x676   :  { %456 = dma.vmem_to_hbm [thread:$0]  %s451_s19, 256, %s727_s6, [#allocation5], %s603_s26, %s603_s26, %s604_s27  }
 0x677   :  { %597 = dma.done.wait [#allocation5], 256  }
 0x678   :  { %598 = vsyncadd [#allocation5], 4294967040 }
 0x679   :  { %460 = vsyncpa [#allocation5], 1 }

</bundles_post_ra>
